<compile_context>
chip_gen: v5e
topology: v5e:2x2
jax: 0.10.0
libtpu: 0.0.40
codegen_flags: <defaults>
</compile_context>

<pallas_src>
import jax
import jax.numpy as jnp
from jax import lax
from jax.experimental import pallas as pl
from jax.experimental.pallas import tpu as pltpu


def _round_up(x: int, m: int) -> int:
    return ((x + m - 1) // m) * m


def output_block_kernel(feat_ref, w1_ref, b1_ref, w2_ref, b2_ref, packed_ref):
    """One grid step = one batch-block of NB samples.

    feat_ref   : (NB, T, W)   feature block
    w1_ref     : (W, H)       butter weight (pre-transposed), grid-resident
    b1_ref     : (1, H)
    w2_ref     : (C, T, H)    classifier weight, lane-dense (H=256 on lanes)
    b2_ref     : (1, C)
    packed_ref : (NB, 2*C)    [:, :C] = logits, [:, C:] = hazards
    """
    nb, t_tokens, w_in = feat_ref.shape
    h_dim = w1_ref.shape[1]
    n_classes = w2_ref.shape[0]

    # ---- butter: one MXU matmul over the whole batch block ------------------
    # (NB, T, W) -> (NB*T, W): leading-dim collapse only (T is a multiple of 8
    # in the intended configuration, so no lane/sublane relayout).
    feat2d = feat_ref[...].reshape(nb * t_tokens, w_in)
    h2d = jnp.dot(feat2d, w1_ref[...],
                  preferred_element_type=jnp.float32) + b1_ref[...]
    h3 = h2d.reshape(nb, t_tokens, h_dim)               # (NB, T, H)

    # ---- classifier on the flattened per-sample h.view(1, -1) ---------------
    # logits[n, c] = sum_t sum_d h[n, t, d] * w2[c, t, d] + b2[c]
    # T accumulating matmuls (contract the lane-dense H dim of both operands);
    # temporaries stay at (NB, H)/(NB, C) -- no lane-crossing T*H flatten, no
    # broadcast to (C, NB, T, H).
    logits = jnp.zeros((nb, n_classes), jnp.float32)
    for t in range(t_tokens):                            # static, small trip-count
        logits = logits + lax.dot_general(
            h3[:, t, :], w2_ref[:, t, :],
            dimension_numbers=(((1,), (1,)), ((), ())),  # contract H of both
            preferred_element_type=jnp.float32)
    logits = logits + b2_ref[...]                        # (NB, C)

    # ---- hazards = sigmoid(logits)  (EUP, f32) -------------------------------
    hazards = jax.nn.sigmoid(logits)

    # Single lane-concatenated writeback per grid step.
    packed_ref[...] = jnp.concatenate([logits, hazards], axis=-1)


def output_block_batched(features, w1, b1, w2, b2, *, block_n=None):
    """Batched OutputBlock forward.

    features: (N, num_tokens, wsi_size) float32
    w1: (wsi_size, 256) [butter weight, pre-transposed], b1: (256,)
    w2: (n_classes, num_tokens*256) [torch nn.Linear layout], b2: (n_classes,)
    Returns (logits (N, C), hazards (N, C), Y_hat (N, 1) int32).
    """
    n, t, w = features.shape
    h = w1.shape[1]                 # 256, fixed by the module
    c = w2.shape[0]
    assert w2.shape[1] == t * h

    # Batch-block size: target NB*T >= 256 butter-matmul rows (full MXU pass on
    # v6e/v7x, 2x128 rows on v5e); NB multiple of 8 so the 2-D (N, 2C) output
    # block is sublane-aligned.  Batch is padded up to a whole number of blocks.
    if block_n is None:
        block_n = max(1, 256 // max(t, 1))
    block_n = max(8, _round_up(block_n, 8))
    block_n = min(block_n, _round_up(n, 8))
    n_blocks = pl.cdiv(n, block_n)
    n_pad = n_blocks * block_n
    feats = features
    if n_pad != n:
        feats = jnp.pad(features, ((0, n_pad - n), (0, 0), (0, 0)))

    # Glue (pure reshapes, no transpose / lane padding): w2 stays lane-dense.
    w2_r = w2.reshape(c, t, h)      # (C, T, 256): 256 on lanes, T on sublanes
    b1_r = b1.reshape(1, h)
    b2_r = b2.reshape(1, c)

    cost = pl.CostEstimate(
        flops=n_pad * (2 * t * w * h + 2 * t * h * c),
        transcendentals=n_pad * c,
        bytes_accessed=4 * (feats.size + w1.size + b1_r.size
                            + w2_r.size + b2_r.size + n_pad * 2 * c),
    )

    packed = pl.pallas_call(
        output_block_kernel,
        grid=(n_blocks,),
        in_specs=[
            pl.BlockSpec((block_n, t, w), lambda i: (i, 0, 0)),   # batch block
            pl.BlockSpec((w, h), lambda i: (0, 0)),               # resident weights
            pl.BlockSpec((1, h), lambda i: (0, 0)),
            pl.BlockSpec((c, t, h), lambda i: (0, 0, 0)),
            pl.BlockSpec((1, c), lambda i: (0, 0)),
        ],
        out_specs=pl.BlockSpec((block_n, 2 * c), lambda i: (i, 0)),
        out_shape=jax.ShapeDtypeStruct((n_pad, 2 * c), jnp.float32),
        compiler_params=pltpu.CompilerParams(
            dimension_semantics=("parallel",)),
        cost_estimate=cost,
    )(feats, w1, b1_r, w2_r, b2_r)

    logits = packed[:n, :c]
    hazards = packed[:n, c:]
    # Argmax moved out of the kernel (perf review): free in XLA on (N, C) and
    # keeps the same first-max tie-break as torch.topk in f32.
    y_hat = jnp.argmax(logits, axis=-1).astype(jnp.int32).reshape(n, 1)
    return logits, hazards, y_hat


def output_block(feature, w1, b1, w2, b2):
    """Single-sample path matching the nn.Module forward exactly.
    feature: (num_tokens, wsi_size) -> (logits (1,C), hazards (1,C), Y_hat (1,1))."""
    return output_block_batched(feature[None], w1, b1, w2, b2)


if __name__ == "__main__":
    # Small shapes consistent with the OutputBlock head of LRENet_2:
    num_tokens = 8        # multiple of 8 -> free in-kernel leading-dim reshape
    wsi_size = 32
    n_classes = 4
    hidden = 256          # fixed by the module (butter output / classifier chunk)
    batch = 48            # NB=32 -> 2 batch blocks (exercises padding + grid)

    key = jax.random.PRNGKey(0)
    k_feat, k_w1, k_b1, k_w2, k_b2 = jax.random.split(key, 5)

    features = jax.random.normal(k_feat, (batch, num_tokens, wsi_size), jnp.float32)
    w1 = jax.random.normal(k_w1, (wsi_size, hidden), jnp.float32) * 0.05
    b1 = jax.random.normal(k_b1, (hidden,), jnp.float32) * 0.05
    w2 = jax.random.normal(k_w2, (n_classes, num_tokens * hidden), jnp.float32) * 0.02
    b2 = jax.random.normal(k_b2, (n_classes,), jnp.float32) * 0.02

    logits, hazards, y_hat = output_block_batched(features, w1, b1, w2, b2)
    jax.block_until_ready((logits, hazards, y_hat))

    # Pure-JAX reference (same math as the PyTorch forward, per sample).
    h_ref = jnp.einsum("ntw,wh->nth", features, w1) + b1
    logits_ref = h_ref.reshape(batch, -1) @ w2.T + b2
    hazards_ref = jax.nn.sigmoid(logits_ref)
    yhat_ref = jnp.argmax(logits_ref, axis=1).reshape(batch, 1).astype(jnp.int32)

    assert logits.shape == (batch, n_classes)
    assert hazards.shape == (batch, n_classes)
    assert y_hat.shape == (batch, 1)
    assert jnp.allclose(logits, logits_ref, atol=1e-4, rtol=1e-4)
    assert jnp.allclose(hazards, hazards_ref, atol=1e-5, rtol=1e-5)
    assert jnp.array_equal(y_hat, yhat_ref)

    # Module-faithful single-sample path (feature: (num_tokens, wsi_size)).
    l1, hz1, yh1 = output_block(features[0], w1, b1, w2, b2)
    jax.block_until_ready((l1, hz1, yh1))
    assert l1.shape == (1, n_classes) and hz1.shape == (1, n_classes) and yh1.shape == (1, 1)
    assert jnp.allclose(l1, logits_ref[0:1], atol=1e-4, rtol=1e-4)
    assert jnp.array_equal(yh1, yhat_ref[0:1])

    print("KERNEL_OK")
</pallas_src>

<mosaic_0001>
module attributes {stable_mosaic.version = 11 : i64} {
  func.func @output_block_kernel(%arg0: i32, %arg1: memref<32x8x32xf32, #tpu.memory_space<vmem>>, %arg2: memref<32x256xf32, #tpu.memory_space<vmem>>, %arg3: memref<1x256xf32, #tpu.memory_space<vmem>>, %arg4: memref<4x8x256xf32, #tpu.memory_space<vmem>>, %arg5: memref<1x4xf32, #tpu.memory_space<vmem>>, %arg6: memref<32x8xf32, #tpu.memory_space<vmem>>) attributes {dimension_semantics = [#tpu.dimension_semantics<parallel>], iteration_bounds = array<i64: 2>, scalar_prefetch = 0 : i64, scratch_operands = 0 : i64, tpu.core_type = #tpu.core_type<tc>, window_params = [{transform_indices = @transform_0, window_bounds = array<i64: 32, 8, 32>}, {pipeline_mode = #tpu.pipeline_mode<synchronous>, transform_indices = @transform_1, window_bounds = array<i64: 32, 256>}, {pipeline_mode = #tpu.pipeline_mode<synchronous>, transform_indices = @transform_2, window_bounds = array<i64: 1, 256>}, {pipeline_mode = #tpu.pipeline_mode<synchronous>, transform_indices = @transform_3, window_bounds = array<i64: 4, 8, 256>}, {pipeline_mode = #tpu.pipeline_mode<synchronous>, transform_indices = @transform_4, window_bounds = array<i64: 1, 4>}, {transform_indices = @transform_5, window_bounds = array<i64: 32, 8>}]} {
    %c0 = arith.constant 0 : index
    %c0_0 = arith.constant 0 : index
    %c0_1 = arith.constant 0 : index
    %0 = vector.load %arg1[%c0, %c0_0, %c0_1] : memref<32x8x32xf32, #tpu.memory_space<vmem>>, vector<32x8x32xf32>
    %1 = vector.shape_cast %0 : vector<32x8x32xf32> to vector<256x32xf32>
    %c0_2 = arith.constant 0 : index
    %c0_3 = arith.constant 0 : index
    %2 = vector.load %arg2[%c0_2, %c0_3] : memref<32x256xf32, #tpu.memory_space<vmem>>, vector<32x256xf32>
    %cst = arith.constant dense<0.000000e+00> : vector<256x256xf32>
    %3 = tpu.matmul %1, %2, %cst {dimension_numbers = #tpu.dot_dimension_numbers<[1], [0], [0], [1], [0, 0, 1, 1], [], []>} : vector<256x32xf32>, vector<32x256xf32>, vector<256x256xf32> -> vector<256x256xf32>
    %c0_4 = arith.constant 0 : index
    %c0_5 = arith.constant 0 : index
    %4 = vector.load %arg3[%c0_4, %c0_5] : memref<1x256xf32, #tpu.memory_space<vmem>>, vector<1x256xf32>
    %5 = vector.broadcast %4 : vector<1x256xf32> to vector<256x256xf32>
    %6 = arith.addf %3, %5 : vector<256x256xf32>
    %7 = vector.shape_cast %6 : vector<256x256xf32> to vector<32x8x256xf32>
    %cst_6 = arith.constant 0.000000e+00 : f32
    %8 = vector.broadcast %cst_6 : f32 to vector<32x4xf32>
    %9 = vector.extract_strided_slice %7 {offsets = [0, 0, 0], sizes = [32, 1, 256], strides = [1, 1, 1]} : vector<32x8x256xf32> to vector<32x1x256xf32>
    %10 = vector.shape_cast %9 : vector<32x1x256xf32> to vector<32x256xf32>
    %c0_7 = arith.constant 0 : index
    %c0_8 = arith.constant 0 : index
    %c0_9 = arith.constant 0 : index
    %11 = vector.load %arg4[%c0_7, %c0_8, %c0_9] : memref<4x8x256xf32, #tpu.memory_space<vmem>>, vector<4x1x256xf32>
    %12 = vector.shape_cast %11 : vector<4x1x256xf32> to vector<4x256xf32>
    %cst_10 = arith.constant dense<0.000000e+00> : vector<32x4xf32>
    %13 = tpu.matmul %10, %12, %cst_10 {dimension_numbers = #tpu.dot_dimension_numbers<[1], [1], [0], [0], [0, 0, 1, 0], [], []>} : vector<32x256xf32>, vector<4x256xf32>, vector<32x4xf32> -> vector<32x4xf32>
    %14 = arith.addf %8, %13 : vector<32x4xf32>
    %15 = vector.extract_strided_slice %7 {offsets = [0, 1, 0], sizes = [32, 1, 256], strides = [1, 1, 1]} : vector<32x8x256xf32> to vector<32x1x256xf32>
    %16 = vector.shape_cast %15 : vector<32x1x256xf32> to vector<32x256xf32>
    %c0_11 = arith.constant 0 : index
    %c1 = arith.constant 1 : index
    %c0_12 = arith.constant 0 : index
    %17 = vector.load %arg4[%c0_11, %c1, %c0_12] : memref<4x8x256xf32, #tpu.memory_space<vmem>>, vector<4x1x256xf32>
    %18 = vector.shape_cast %17 : vector<4x1x256xf32> to vector<4x256xf32>
    %cst_13 = arith.constant dense<0.000000e+00> : vector<32x4xf32>
    %19 = tpu.matmul %16, %18, %cst_13 {dimension_numbers = #tpu.dot_dimension_numbers<[1], [1], [0], [0], [0, 0, 1, 0], [], []>} : vector<32x256xf32>, vector<4x256xf32>, vector<32x4xf32> -> vector<32x4xf32>
    %20 = arith.addf %14, %19 : vector<32x4xf32>
    %21 = vector.extract_strided_slice %7 {offsets = [0, 2, 0], sizes = [32, 1, 256], strides = [1, 1, 1]} : vector<32x8x256xf32> to vector<32x1x256xf32>
    %22 = vector.shape_cast %21 : vector<32x1x256xf32> to vector<32x256xf32>
    %c0_14 = arith.constant 0 : index
    %c2 = arith.constant 2 : index
    %c0_15 = arith.constant 0 : index
    %23 = vector.load %arg4[%c0_14, %c2, %c0_15] : memref<4x8x256xf32, #tpu.memory_space<vmem>>, vector<4x1x256xf32>
    %24 = vector.shape_cast %23 : vector<4x1x256xf32> to vector<4x256xf32>
    %cst_16 = arith.constant dense<0.000000e+00> : vector<32x4xf32>
    %25 = tpu.matmul %22, %24, %cst_16 {dimension_numbers = #tpu.dot_dimension_numbers<[1], [1], [0], [0], [0, 0, 1, 0], [], []>} : vector<32x256xf32>, vector<4x256xf32>, vector<32x4xf32> -> vector<32x4xf32>
    %26 = arith.addf %20, %25 : vector<32x4xf32>
    %27 = vector.extract_strided_slice %7 {offsets = [0, 3, 0], sizes = [32, 1, 256], strides = [1, 1, 1]} : vector<32x8x256xf32> to vector<32x1x256xf32>
    %28 = vector.shape_cast %27 : vector<32x1x256xf32> to vector<32x256xf32>
    %c0_17 = arith.constant 0 : index
    %c3 = arith.constant 3 : index
    %c0_18 = arith.constant 0 : index
    %29 = vector.load %arg4[%c0_17, %c3, %c0_18] : memref<4x8x256xf32, #tpu.memory_space<vmem>>, vector<4x1x256xf32>
    %30 = vector.shape_cast %29 : vector<4x1x256xf32> to vector<4x256xf32>
    %cst_19 = arith.constant dense<0.000000e+00> : vector<32x4xf32>
    %31 = tpu.matmul %28, %30, %cst_19 {dimension_numbers = #tpu.dot_dimension_numbers<[1], [1], [0], [0], [0, 0, 1, 0], [], []>} : vector<32x256xf32>, vector<4x256xf32>, vector<32x4xf32> -> vector<32x4xf32>
    %32 = arith.addf %26, %31 : vector<32x4xf32>
    %33 = vector.extract_strided_slice %7 {offsets = [0, 4, 0], sizes = [32, 1, 256], strides = [1, 1, 1]} : vector<32x8x256xf32> to vector<32x1x256xf32>
    %34 = vector.shape_cast %33 : vector<32x1x256xf32> to vector<32x256xf32>
    %c0_20 = arith.constant 0 : index
    %c4 = arith.constant 4 : index
    %c0_21 = arith.constant 0 : index
    %35 = vector.load %arg4[%c0_20, %c4, %c0_21] : memref<4x8x256xf32, #tpu.memory_space<vmem>>, vector<4x1x256xf32>
    %36 = vector.shape_cast %35 : vector<4x1x256xf32> to vector<4x256xf32>
    %cst_22 = arith.constant dense<0.000000e+00> : vector<32x4xf32>
    %37 = tpu.matmul %34, %36, %cst_22 {dimension_numbers = #tpu.dot_dimension_numbers<[1], [1], [0], [0], [0, 0, 1, 0], [], []>} : vector<32x256xf32>, vector<4x256xf32>, vector<32x4xf32> -> vector<32x4xf32>
    %38 = arith.addf %32, %37 : vector<32x4xf32>
    %39 = vector.extract_strided_slice %7 {offsets = [0, 5, 0], sizes = [32, 1, 256], strides = [1, 1, 1]} : vector<32x8x256xf32> to vector<32x1x256xf32>
    %40 = vector.shape_cast %39 : vector<32x1x256xf32> to vector<32x256xf32>
    %c0_23 = arith.constant 0 : index
    %c5 = arith.constant 5 : index
    %c0_24 = arith.constant 0 : index
    %41 = vector.load %arg4[%c0_23, %c5, %c0_24] : memref<4x8x256xf32, #tpu.memory_space<vmem>>, vector<4x1x256xf32>
    %42 = vector.shape_cast %41 : vector<4x1x256xf32> to vector<4x256xf32>
    %cst_25 = arith.constant dense<0.000000e+00> : vector<32x4xf32>
    %43 = tpu.matmul %40, %42, %cst_25 {dimension_numbers = #tpu.dot_dimension_numbers<[1], [1], [0], [0], [0, 0, 1, 0], [], []>} : vector<32x256xf32>, vector<4x256xf32>, vector<32x4xf32> -> vector<32x4xf32>
    %44 = arith.addf %38, %43 : vector<32x4xf32>
    %45 = vector.extract_strided_slice %7 {offsets = [0, 6, 0], sizes = [32, 1, 256], strides = [1, 1, 1]} : vector<32x8x256xf32> to vector<32x1x256xf32>
    %46 = vector.shape_cast %45 : vector<32x1x256xf32> to vector<32x256xf32>
    %c0_26 = arith.constant 0 : index
    %c6 = arith.constant 6 : index
    %c0_27 = arith.constant 0 : index
    %47 = vector.load %arg4[%c0_26, %c6, %c0_27] : memref<4x8x256xf32, #tpu.memory_space<vmem>>, vector<4x1x256xf32>
    %48 = vector.shape_cast %47 : vector<4x1x256xf32> to vector<4x256xf32>
    %cst_28 = arith.constant dense<0.000000e+00> : vector<32x4xf32>
    %49 = tpu.matmul %46, %48, %cst_28 {dimension_numbers = #tpu.dot_dimension_numbers<[1], [1], [0], [0], [0, 0, 1, 0], [], []>} : vector<32x256xf32>, vector<4x256xf32>, vector<32x4xf32> -> vector<32x4xf32>
    %50 = arith.addf %44, %49 : vector<32x4xf32>
    %51 = vector.extract_strided_slice %7 {offsets = [0, 7, 0], sizes = [32, 1, 256], strides = [1, 1, 1]} : vector<32x8x256xf32> to vector<32x1x256xf32>
    %52 = vector.shape_cast %51 : vector<32x1x256xf32> to vector<32x256xf32>
    %c0_29 = arith.constant 0 : index
    %c7 = arith.constant 7 : index
    %c0_30 = arith.constant 0 : index
    %53 = vector.load %arg4[%c0_29, %c7, %c0_30] : memref<4x8x256xf32, #tpu.memory_space<vmem>>, vector<4x1x256xf32>
    %54 = vector.shape_cast %53 : vector<4x1x256xf32> to vector<4x256xf32>
    %cst_31 = arith.constant dense<0.000000e+00> : vector<32x4xf32>
    %55 = tpu.matmul %52, %54, %cst_31 {dimension_numbers = #tpu.dot_dimension_numbers<[1], [1], [0], [0], [0, 0, 1, 0], [], []>} : vector<32x256xf32>, vector<4x256xf32>, vector<32x4xf32> -> vector<32x4xf32>
    %56 = arith.addf %50, %55 : vector<32x4xf32>
    %c0_32 = arith.constant 0 : index
    %c0_33 = arith.constant 0 : index
    %57 = vector.load %arg5[%c0_32, %c0_33] : memref<1x4xf32, #tpu.memory_space<vmem>>, vector<1x4xf32>
    %58 = vector.broadcast %57 : vector<1x4xf32> to vector<32x4xf32>
    %59 = arith.addf %56, %58 : vector<32x4xf32>
    %60 = arith.negf %59 : vector<32x4xf32>
    %61 = math.exp %60 : vector<32x4xf32>
    %cst_34 = arith.constant 1.000000e+00 : f32
    %62 = vector.broadcast %cst_34 : f32 to vector<32x4xf32>
    %63 = arith.addf %62, %61 : vector<32x4xf32>
    %64 = arith.divf %62, %63 : vector<32x4xf32>
    %65 = tpu.concatenate %59, %64 in 1 : vector<32x4xf32>, vector<32x4xf32> -> vector<32x8xf32>
    %c0_35 = arith.constant 0 : index
    %c0_36 = arith.constant 0 : index
    %66 = vector.load %arg6[%c0_35, %c0_36] : memref<32x8xf32, #tpu.memory_space<vmem>>, vector<32x8xf32>
    tpu.vector_store %arg6[%c0_35, %c0_36], %65 {strides = array<i32>} : memref<32x8xf32, #tpu.memory_space<vmem>>, vector<32x8xf32>,
    return
  }
  func.func @transform_0(%arg0: i32) -> (i32, i32, i32) {
    %c0_i32 = arith.constant 0 : i32
    %c0_i32_0 = arith.constant 0 : i32
    %c0_i32_1 = arith.constant 0 : i32
    return %arg0, %c0_i32, %c0_i32_0 : i32, i32, i32
  }
  func.func @transform_1(%arg0: i32) -> (i32, i32) {
    %c0_i32 = arith.constant 0 : i32
    %c0_i32_0 = arith.constant 0 : i32
    %c0_i32_1 = arith.constant 0 : i32
    return %c0_i32, %c0_i32_0 : i32, i32
  }
  func.func @transform_2(%arg0: i32) -> (i32, i32) {
    %c0_i32 = arith.constant 0 : i32
    %c0_i32_0 = arith.constant 0 : i32
    %c0_i32_1 = arith.constant 0 : i32
    return %c0_i32, %c0_i32_0 : i32, i32
  }
  func.func @transform_3(%arg0: i32) -> (i32, i32, i32) {
    %c0_i32 = arith.constant 0 : i32
    %c0_i32_0 = arith.constant 0 : i32
    %c0_i32_1 = arith.constant 0 : i32
    %c0_i32_2 = arith.constant 0 : i32
    return %c0_i32, %c0_i32_0, %c0_i32_1 : i32, i32, i32
  }
  func.func @transform_4(%arg0: i32) -> (i32, i32) {
    %c0_i32 = arith.constant 0 : i32
    %c0_i32_0 = arith.constant 0 : i32
    %c0_i32_1 = arith.constant 0 : i32
    return %c0_i32, %c0_i32_0 : i32, i32
  }
  func.func @transform_5(%arg0: i32) -> (i32, i32) {
    %c0_i32 = arith.constant 0 : i32
    %c0_i32_0 = arith.constant 0 : i32
    return %arg0, %c0_i32 : i32, i32
  }
}

</mosaic_0001>

<bundles_post_ra>
// kernel: tpu_custom_call.1
= control target key start
LH: loop header
LB: loop body
LE: loop exit
PB: predicated region body
PF: predicated region fallthrough
CT: control target
= control target key end

     0   :  { %s2640_s18 = smov 0   ;;  %s3891_s0 = inlined_call_operand.vmem [shape: f32[64,8,32], index: 0, kind: input, shape index: {}]   ;;  %s3892_s1 = inlined_call_operand.vmem [shape: f32[32,256], index: 1, kind: input, shape index: {}]   ;;  %s3893_s2 = inlined_call_operand.vmem [shape: f32[1,256], index: 2, kind: input, shape index: {}]   ;;  %s3894_s3 = inlined_call_operand.vmem [shape: f32[4,8,256], index: 3, kind: input, shape index: {}]   ;;  %s3895_s4 = inlined_call_operand.vmem [shape: f32[1,4], index: 4, kind: input, shape index: {}]   ;;  %s3896_s5 = inlined_call_operand.vmem [shape: f32[64,8], index: 5, kind: output, shape index: {}]  }
   0x1 LB: > { %s2465_s19 = sadd.s32 4294967295, %s2607_s18   ;;  %p2469_p0 = scmp.ge.s32.totalorder %s2607_s18, 1  ;;  %s2607_s18 = sphi %s2640_s18, %s15_s18  }
   0x2   : > { %p188_p1 = scmp.lt.s32.totalorder %s2607_s18, 3 }
   0x4   : > { %p189_p2 = pnand %p2469_p0, %p188_p1 }
   0x6   : > { %192 = sbr.rel (%p189_p2) target bundleno = 906 (0x38a), region = 40 }
   0xb   : > { %v266_v0 = vld [vmem:[%s3892_s1 + $0x30] sm:$0xff]  ;;  %v267_v1 = vld [vmem:[%s3892_s1 + $0x38] sm:$0xff]  ;;  %v264_v2 = vld [vmem:[%s3892_s1 + $0x20] sm:$0xff]  ;;  %s2470_s26 = sshll.u32 %s2465_s19, 5  ;;  %vm274_vm0 = vcmask 261120   ;;  %vm677_vm1 = vcmask 1041409  }
   0xc   : > { %383 = vmatpush.msra.mxu0 %v266_v0  ;;  %496 = vmatpush.msra.mxu1 %v267_v1  ;;  %v265_v3 = vld [vmem:[%s3892_s1 + $0x28] sm:$0xff]  ;;  %p217_p3 = scmp.lt.s32.totalorder %s2470_s26, 63  ;;  %v262_v4 = vld [vmem:[%s3892_s1 + $0x10] sm:$0xff]  ;;  %v263_v5 = vld [vmem:[%s3892_s1 + $0x18] sm:$0xff]  ;;  %vm680_vm2 = vcmask 1042434   ;;  %vm683_vm3 = vcmask 1043459  }
   0xd   : > { %v260_v6 = vld [vmem:[%s3892_s1] sm:$0xff]  ;;  %v261_v7 = vld [vmem:[%s3892_s1 + $0x8] sm:$0xff]  ;;  %vm686_vm4 = vcmask 1044484   ;;  %vm689_vm5 = vcmask 1045509   ;;  %vm692_vm6 = vcmask 1046534   ;;  %vm695_vm7 = vcmask 1047559  }
   0xe   : > { %384 = vmatpush.msra.mxu0 %v264_v2  ;;  %497 = vmatpush.msra.mxu1 %v265_v3  ;;  %s3956_s26 = smov (!%p217_p3, %s2470_s26), 63  ;;  %v268_v24 = vld [vmem:[%s3893_s2] sm:$0x3]  ;;  %s2472_s16 = sshll.u32 %s2465_s19, 2 }
   0xf   : > { %s2471_s12 = sshll.u32 %s3956_s26, 3  ;;  %v2730_v25 = vperm.slane %v268_v24, 0  ;;  %v2732_v27 = vperm.slane %v268_v24, 1  ;;  %p223_p4 = scmp.lt.s32.totalorder %s2472_s16, 7 }
  0x10   : > { %385 = vmatpush.msra.mxu0 %v262_v4  ;;  %498 = vmatpush.msra.mxu1 %v263_v5  ;;  %s2677_s15 = scalar_lea.vmem %s3891_s0, %s2471_s12 }
  0x11   : > { %v228_v8 = vld [vmem:[%s2677_s15] sm:$0xff]  ;;  %v229_v9 = vld [vmem:[%s2677_s15 + $0x8] sm:$0xff]  ;;  %v230_v10 = vld [vmem:[%s2677_s15 + $0x10] sm:$0xff]  ;;  %s3958_s16 = smov (!%p223_p4, %s2472_s16), 7 }
  0x12   : > { %386 = vmatpush.msra.mxu0 %v260_v6  ;;  %499 = vmatpush.msra.mxu1 %v261_v7  ;;  %v231_v11 = vld [vmem:[%s2677_s15 + $0x18] sm:$0xff]  ;;  %v232_v12 = vld [vmem:[%s2677_s15 + $0x20] sm:$0xff]  ;;  %v233_v13 = vld [vmem:[%s2677_s15 + $0x28] sm:$0xff]  ;;  %s2473_s17 = sshll.u32 %s3958_s16, 3 }
  0x13   : > { %2474 = vmatmul.msk.f32.vlgmr.msra.gmra.mxu0 %vm274_vm0, %v228_v8  ;;  %2506 = vmatmul.msk.f32.vlgmr.msra.gmra.mxu1 %vm274_vm0, %v228_v8  ;;  %v234_v14 = vld [vmem:[%s2677_s15 + $0x30] sm:$0xff]  ;;  %v235_v15 = vld [vmem:[%s2677_s15 + $0x38] sm:$0xff]  ;;  %v236_v16 = vld [vmem:[%s2677_s15 + $0x40] sm:$0xff]  ;;  %s226_s22 = scalar_lea.vmem %s3896_s5, %s2473_s17 }
  0x14   : > { %v237_v17 = vld [vmem:[%s2677_s15 + $0x48] sm:$0xff]  ;;  %v238_v18 = vld [vmem:[%s2677_s15 + $0x50] sm:$0xff]  ;;  %v239_v19 = vld [vmem:[%s2677_s15 + $0x58] sm:$0xff] }
  0x15   : > { %v240_v20 = vld [vmem:[%s2677_s15 + $0x60] sm:$0xff]  ;;  %v241_v21 = vld [vmem:[%s2677_s15 + $0x68] sm:$0xff]  ;;  %v242_v22 = vld [vmem:[%s2677_s15 + $0x70] sm:$0xff] }
  0x16   : > { %v243_v23 = vld [vmem:[%s2677_s15 + $0x78] sm:$0xff]  ;;  %v244_v29 = vld [vmem:[%s2677_s15 + $0x80] sm:$0xff]  ;;  %v245_v35 = vld [vmem:[%s2677_s15 + $0x88] sm:$0xff] }
  0x17   : > { %v246_v6 = vld [vmem:[%s2677_s15 + $0x90] sm:$0xff] }
  0x1b   : > { %2475 = vmatmul.msk.f32.gmra.mxu0 %vm274_vm0, %v229_v9  ;;  %2507 = vmatmul.msk.f32.gmra.mxu1 %vm274_vm0, %v229_v9 }
  0x23   : > { %2476 = vmatmul.msk.f32.gmra.mxu0 %vm274_vm0, %v230_v10  ;;  %2508 = vmatmul.msk.f32.gmra.mxu1 %vm274_vm0, %v230_v10 }
  0x2b   : > { %2477 = vmatmul.msk.f32.gmra.mxu0 %vm274_vm0, %v231_v11  ;;  %2509 = vmatmul.msk.f32.gmra.mxu1 %vm274_vm0, %v231_v11 }
  0x33   : > { %2478 = vmatmul.msk.f32.gmra.mxu0 %vm274_vm0, %v232_v12  ;;  %2510 = vmatmul.msk.f32.gmra.mxu1 %vm274_vm0, %v232_v12 }
  0x3b   : > { %2479 = vmatmul.msk.f32.gmra.mxu0 %vm274_vm0, %v233_v13  ;;  %2511 = vmatmul.msk.f32.gmra.mxu1 %vm274_vm0, %v233_v13 }
  0x43   : > { %2480 = vmatmul.msk.f32.gmra.mxu0 %vm274_vm0, %v234_v14  ;;  %2512 = vmatmul.msk.f32.gmra.mxu1 %vm274_vm0, %v234_v14 }
  0x4b   : > { %2481 = vmatmul.msk.f32.gmra.mxu0 %vm274_vm0, %v235_v15  ;;  %2513 = vmatmul.msk.f32.gmra.mxu1 %vm274_vm0, %v235_v15  ;;  %v2541_v15 = vld [vmem:[%s3894_s3 + $0x1] ss:$8 sm:$0x3] }
  0x4c   : > { %807 = vst [vmem:[#allocation1] ss:$9 sm:$0xff] %v2541_v15 }
  0x53   : > { %2482 = vmatmul.msk.f32.gmra.mxu0 %vm274_vm0, %v236_v16  ;;  %2514 = vmatmul.msk.f32.gmra.mxu1 %vm274_vm0, %v236_v16  ;;  %v2542_v16 = vld [vmem:[%s3894_s3 + $0x11] ss:$8 sm:$0x3] }
  0x54   : > { %809 = vst [vmem:[#allocation1 + $0x1] ss:$9 sm:$0xff] %v2542_v16 }
  0x5b   : > { %2483 = vmatmul.msk.f32.gmra.mxu0 %vm274_vm0, %v237_v17  ;;  %2515 = vmatmul.msk.f32.gmra.mxu1 %vm274_vm0, %v237_v17 }
  0x63   : > { %2484 = vmatmul.msk.f32.gmra.mxu0 %vm274_vm0, %v238_v18  ;;  %2516 = vmatmul.msk.f32.gmra.mxu1 %vm274_vm0, %v238_v18 }
  0x6b   : > { %2485 = vmatmul.msk.f32.gmra.mxu0 %vm274_vm0, %v239_v19  ;;  %2517 = vmatmul.msk.f32.gmra.mxu1 %vm274_vm0, %v239_v19 }
  0x73   : > { %2486 = vmatmul.msk.f32.gmra.mxu0 %vm274_vm0, %v240_v20  ;;  %2518 = vmatmul.msk.f32.gmra.mxu1 %vm274_vm0, %v240_v20 }
  0x7b   : > { %2487 = vmatmul.msk.f32.gmra.mxu0 %vm274_vm0, %v241_v21  ;;  %2519 = vmatmul.msk.f32.gmra.mxu1 %vm274_vm0, %v241_v21  ;;  %v2543_v21 = vld [vmem:[%s3894_s3 + $0x21] ss:$8 sm:$0x3] }
  0x7c   : > { %811 = vst [vmem:[#allocation1 + $0x2] ss:$9 sm:$0xff] %v2543_v21 }
  0x83   : > { %2488 = vmatmul.msk.f32.gmra.mxu0 %vm274_vm0, %v242_v22  ;;  %2520 = vmatmul.msk.f32.gmra.mxu1 %vm274_vm0, %v242_v22  ;;  %v2544_v22 = vld [vmem:[%s3894_s3 + $0x31] ss:$8 sm:$0x3] }
  0x84   : > { %813 = vst [vmem:[#allocation1 + $0x3] ss:$9 sm:$0xff] %v2544_v22  ;;  %v248_v22 = vld [vmem:[%s2677_s15 + $0xa0] sm:$0xff] }
  0x8b   : > { %2489 = vmatmul.msk.f32.gmra.mxu0 %vm274_vm0, %v243_v23  ;;  %2521 = vmatmul.msk.f32.gmra.mxu1 %vm274_vm0, %v243_v23 }
  0x90   : > { %v388_v26 = vpop.f32.mrf.mxu0  ;;  %v501_v28 = vpop.f32.mrf.mxu1 }
  0x91   : > { %v2736_v30 = vadd.f32 %v388_v26, %v2730_v25  ;;  %v2741_v31 = vadd.f32 %v501_v28, %v2732_v27 }
  0x93   : > { %2490 = vmatmul.msk.f32.gmra.mxu0 %vm274_vm0, %v244_v29  ;;  %2522 = vmatmul.msk.f32.gmra.mxu1 %vm274_vm0, %v244_v29  ;;  %v676_v32 = vrot.slane %v2736_v30, 1  ;;  %v697_v36 = vrot.slane %v2741_v31, 1  ;;  %v1077_v37 = vrot.slane %v2736_v30, 2  ;;  %v1091_v38 = vrot.slane %v2741_v31, 2 }
  0x94   : > { %v1282_v39 = vrot.slane %v2736_v30, 3  ;;  %v1296_v42 = vrot.slane %v2741_v31, 3  ;;  %v1487_v43 = vrot.slane %v2736_v30, 4  ;;  %v1501_v44 = vrot.slane %v2741_v31, 4 }
  0x95   : > { %v1692_v45 = vrot.slane %v2736_v30, 5  ;;  %v1706_v46 = vrot.slane %v2741_v31, 5  ;;  %v1897_v47 = vrot.slane %v2736_v30, 6  ;;  %v1911_v49 = vrot.slane %v2741_v31, 6 }
  0x96   : > { %v2102_v50 = vrot.slane %v2736_v30, 7  ;;  %v2116_v51 = vrot.slane %v2741_v31, 7 }
  0x98   : > { %v391_v33 = vpop.f32.mrf.mxu0  ;;  %v504_v34 = vpop.f32.mrf.mxu1 }
  0x99   : > { %v392_v40 = vadd.f32 %v391_v33, %v2730_v25  ;;  %v2751_v41 = vadd.f32 %v504_v34, %v2732_v27 }
  0x9b   : > { %2491 = vmatmul.msk.f32.gmra.mxu0 %vm274_vm0, %v245_v35  ;;  %2523 = vmatmul.msk.f32.gmra.mxu1 %vm274_vm0, %v245_v35  ;;  %v876_v48 = vrot.slane %v392_v40, 7  ;;  %v890_v52 = vrot.slane %v2751_v41, 7  ;;  %v1078_v53 = vrot.slane %v392_v40, 1  ;;  %v1092_v54 = vrot.slane %v2751_v41, 1 }
  0x9c   : > { %v1283_v55 = vrot.slane %v392_v40, 2  ;;  %v1297_v57 = vrot.slane %v2751_v41, 2  ;;  %v1488_v58 = vrot.slane %v392_v40, 3  ;;  %v1502_v59 = vrot.slane %v2751_v41, 3 }
  0x9d   : > { %v877_v56 = vsel %vm677_vm1, %v876_v48, %v2736_v30  ;;  %v891_v60 = vsel %vm677_vm1, %v890_v52, %v2741_v31  ;;  %v1079_v61 = vsel %vm677_vm1, %v1078_v53, %v1077_v37  ;;  %v1093_v62 = vsel %vm677_vm1, %v1092_v54, %v1091_v38 }
  0x9e   : > { %v1284_v63 = vsel %vm677_vm1, %v1283_v55, %v1282_v39  ;;  %v1298_v0 = vsel %vm677_vm1, %v1297_v57, %v1296_v42  ;;  %v1489_v1 = vsel %vm677_vm1, %v1488_v58, %v1487_v43  ;;  %v1503_v2 = vsel %vm677_vm1, %v1502_v59, %v1501_v44 }
  0x9f   : > { %v1693_v3 = vrot.slane %v392_v40, 4  ;;  %v1707_v7 = vrot.slane %v2751_v41, 4  ;;  %v1898_v8 = vrot.slane %v392_v40, 5  ;;  %v1912_v9 = vrot.slane %v2751_v41, 5 }
  0xa0   : > { %v394_v4 = vpop.f32.mrf.mxu0  ;;  %v507_v5 = vpop.f32.mrf.mxu1  ;;  %v2103_v10 = vrot.slane %v392_v40, 6  ;;  %v2117_v14 = vrot.slane %v2751_v41, 6  ;;  %v678_v28 = vsel %vm677_vm1, %v392_v40, %v676_v32  ;;  %v698_v32 = vsel %vm677_vm1, %v2751_v41, %v697_v36 }
  0xa1   : > { %v2782_v11 = vadd.f32 %v394_v4, %v2730_v25  ;;  %v2785_v12 = vadd.f32 %v507_v5, %v2732_v27  ;;  %v1694_v13 = vsel %vm677_vm1, %v1693_v3, %v1692_v45  ;;  %v1708_v17 = vsel %vm677_vm1, %v1707_v7, %v1706_v46  ;;  %v814_v7 = vld [vmem:[#allocation1] sm:$0xff] }
  0xa2   : > { %v1899_v18 = vsel %vm677_vm1, %v1898_v8, %v1897_v47  ;;  %v2798_v19 = vsel %vm677_vm1, %v1912_v9, %v1911_v49  ;;  %v2801_v20 = vsel %vm677_vm1, %v2103_v10, %v2102_v50  ;;  %v2816_v26 = vsel %vm677_vm1, %v2117_v14, %v2116_v51  ;;  %v247_v49 = vld [vmem:[%s2677_s15 + $0x98] sm:$0xff]  ;;  %v815_v8 = vld [vmem:[#allocation1 + $0x9] sm:$0xff]  ;;  %833 = vmatpush.xpose.msra.mxu2 %v814_v7 }
  0xa3   : > { %2492 = vmatmul.msk.f32.gmra.mxu0 %vm274_vm0, %v246_v6  ;;  %2524 = vmatmul.msk.f32.gmra.mxu1 %vm274_vm0, %v246_v6  ;;  %v1080_v23 = vsel %vm680_vm2, %v2782_v11, %v1079_v61  ;;  %v1094_v24 = vsel %vm680_vm2, %v2785_v12, %v1093_v62  ;;  %v679_v29 = vrot.slane %v2782_v11, 7  ;;  %v699_v33 = vrot.slane %v2785_v12, 7 }
  0xa4   : > { %v878_v34 = vrot.slane %v2782_v11, 6  ;;  %v892_v35 = vrot.slane %v2785_v12, 6  ;;  %v1285_v37 = vrot.slane %v2782_v11, 1  ;;  %v1299_v38 = vrot.slane %v2785_v12, 1  ;;  %862 = vmatpush.xpose.msra.mxu3 %v815_v8 }
  0xa5   : > { %v1490_v39 = vrot.slane %v2782_v11, 2  ;;  %v681_v30 = vsel %vm680_vm2, %v679_v29, %v678_v28  ;;  %v1504_v42 = vrot.slane %v2785_v12, 2  ;;  %v1695_v36 = vrot.slane %v2782_v11, 3 }
  0xa6   : > { %v879_v40 = vsel %vm680_vm2, %v878_v34, %v877_v56  ;;  %v893_v43 = vsel %vm680_vm2, %v892_v35, %v891_v60  ;;  %v1286_v44 = vsel %vm680_vm2, %v1285_v37, %v1284_v63  ;;  %v1300_v45 = vsel %vm680_vm2, %v1299_v38, %v1298_v0 }
  0xa7   : > { %v1491_v46 = vsel %vm680_vm2, %v1490_v39, %v1489_v1  ;;  %v1505_v31 = vsel %vm680_vm2, %v1504_v42, %v1503_v2  ;;  %v1709_v41 = vrot.slane %v2785_v12, 3  ;;  %v1900_v50 = vrot.slane %v2782_v11, 4 }
  0xa8   : > { %v397_v47 = vpop.f32.mrf.mxu0  ;;  %v510_v48 = vpop.f32.mrf.mxu1  ;;  %v700_v53 = vsel %vm680_vm2, %v699_v33, %v698_v32  ;;  %v1914_v54 = vrot.slane %v2785_v12, 4  ;;  %v1696_v55 = vsel %vm680_vm2, %v1695_v36, %v1694_v13  ;;  %v2105_v58 = vrot.slane %v2782_v11, 5 }
  0xa9   : > { %v2845_v51 = vadd.f32 %v397_v47, %v2730_v25  ;;  %v2848_v52 = vadd.f32 %v510_v48, %v2732_v27  ;;  %v1710_v56 = vsel %vm680_vm2, %v1709_v41, %v1708_v17  ;;  %v1901_v57 = vsel %vm680_vm2, %v1900_v50, %v1899_v18 }
  0xaa   : > { %v2119_v62 = vrot.slane %v2785_v12, 5  ;;  %v2106_v29 = vsel %vm680_vm2, %v2105_v58, %v2801_v20 }
  0xab   : > { %2493 = vmatmul.msk.f32.gmra.mxu0 %vm274_vm0, %v247_v49  ;;  %2525 = vmatmul.msk.f32.gmra.mxu1 %vm274_vm0, %v247_v49  ;;  %v682_v59 = vrot.slane %v2845_v51, 6  ;;  %v701_v60 = vrot.slane %v2848_v52, 6  ;;  %v880_v61 = vrot.slane %v2845_v51, 5  ;;  %v894_v63 = vrot.slane %v2848_v52, 5 }
  0xac   : > { %v1081_v0 = vrot.slane %v2845_v51, 7  ;;  %v1095_v1 = vrot.slane %v2848_v52, 7  ;;  %v1287_v2 = vsel %vm683_vm3, %v2845_v51, %v1286_v44  ;;  %v1301_v6 = vsel %vm683_vm3, %v2848_v52, %v1300_v45 }
  0xad   : > { %v684_v3 = vsel %vm683_vm3, %v682_v59, %v681_v30  ;;  %v702_v4 = vsel %vm683_vm3, %v701_v60, %v700_v53  ;;  %v881_v5 = vsel %vm683_vm3, %v880_v61, %v879_v40  ;;  %v895_v9 = vsel %vm683_vm3, %v894_v63, %v893_v43  ;;  %v249_v59 = vld [vmem:[%s2677_s15 + $0xa8] sm:$0xff] }
  0xae   : > { %v1082_v10 = vsel %vm683_vm3, %v1081_v0, %v1080_v23  ;;  %v1096_v11 = vsel %vm683_vm3, %v1095_v1, %v1094_v24  ;;  %v1492_v13 = vrot.slane %v2845_v51, 1  ;;  %v1506_v14 = vrot.slane %v2848_v52, 1 }
  0xaf   : > { %v1697_v15 = vrot.slane %v2845_v51, 2  ;;  %v1711_v16 = vrot.slane %v2848_v52, 2  ;;  %v1902_v17 = vrot.slane %v2845_v51, 3  ;;  %v1915_v23 = vsel %vm680_vm2, %v1914_v54, %v2798_v19 }
  0xb0   : > { %v400_v18 = vpop.f32.mrf.mxu0  ;;  %v513_v21 = vpop.f32.mrf.mxu1  ;;  %v1493_v28 = vsel %vm683_vm3, %v1492_v13, %v1491_v46  ;;  %v1916_v24 = vrot.slane %v2848_v52, 3  ;;  %v1507_v35 = vsel %vm683_vm3, %v1506_v14, %v1505_v31  ;;  %v2107_v30 = vrot.slane %v2845_v51, 4 }
  0xb1   : > { %v401_v33 = vadd.f32 %v400_v18, %v2730_v25  ;;  %v2889_v34 = vadd.f32 %v513_v21, %v2732_v27  ;;  %v1698_v37 = vsel %vm683_vm3, %v1697_v15, %v1696_v55  ;;  %v1712_v38 = vsel %vm683_vm3, %v1711_v16, %v1710_v56 }
  0xb2   : > { %v1903_v39 = vsel %vm683_vm3, %v1902_v17, %v1901_v57  ;;  %v1917_v19 = vsel %vm683_vm3, %v1916_v24, %v1915_v23  ;;  %v2108_v63 = vsel %vm683_vm3, %v2107_v30, %v2106_v29  ;;  %v2120_v8 = vsel %vm680_vm2, %v2119_v62, %v2816_v26 }
  0xb3   : > { %2494 = vmatmul.msk.f32.gmra.mxu0 %vm274_vm0, %v248_v22  ;;  %2526 = vmatmul.msk.f32.gmra.mxu1 %vm274_vm0, %v248_v22  ;;  %v685_v20 = vrot.slane %v401_v33, 5  ;;  %v703_v32 = vrot.slane %v2889_v34, 5  ;;  %v882_v40 = vrot.slane %v401_v33, 4  ;;  %v896_v42 = vrot.slane %v2889_v34, 4 }
  0xb4   : > { %v1083_v43 = vrot.slane %v401_v33, 6  ;;  %v1097_v44 = vrot.slane %v2889_v34, 6  ;;  %v1288_v45 = vrot.slane %v401_v33, 7  ;;  %v1302_v46 = vrot.slane %v2889_v34, 7 }
  0xb5   : > { %v687_v47 = vsel %vm686_vm4, %v685_v20, %v684_v3  ;;  %v704_v48 = vsel %vm686_vm4, %v703_v32, %v702_v4  ;;  %v883_v49 = vsel %vm686_vm4, %v882_v40, %v881_v5  ;;  %v897_v31 = vsel %vm686_vm4, %v896_v42, %v895_v9 }
  0xb6   : > { %v1084_v36 = vsel %vm686_vm4, %v1083_v43, %v1082_v10  ;;  %v1098_v41 = vsel %vm686_vm4, %v1097_v44, %v1096_v11  ;;  %v1289_v50 = vsel %vm686_vm4, %v1288_v45, %v1287_v2  ;;  %v1303_v51 = vsel %vm686_vm4, %v1302_v46, %v1301_v6 }
  0xb7   : > { %v1494_v53 = vsel %vm686_vm4, %v401_v33, %v1493_v28  ;;  %v1508_v54 = vsel %vm686_vm4, %v2889_v34, %v1507_v35  ;;  %v1699_v55 = vrot.slane %v401_v33, 1  ;;  %v1713_v56 = vrot.slane %v2889_v34, 1 }
  0xb8   : > { %v403_v57 = vpop.f32.mrf.mxu0  ;;  %v516_v58 = vpop.f32.mrf.mxu1  ;;  %v1904_v60 = vrot.slane %v401_v33, 2  ;;  %v1918_v61 = vrot.slane %v2889_v34, 2  ;;  %v2109_v0 = vrot.slane %v401_v33, 3  ;;  %v2121_v32 = vrot.slane %v2848_v52, 4 }
  0xb9   : > { %v404_v1 = vadd.f32 %v403_v57, %v2730_v25  ;;  %v2920_v2 = vadd.f32 %v516_v58, %v2732_v27  ;;  %v1700_v3 = vsel %vm686_vm4, %v1699_v55, %v1698_v37  ;;  %v1714_v4 = vsel %vm686_vm4, %v1713_v56, %v1712_v38 }
  0xba   : > { %v1905_v5 = vsel %vm686_vm4, %v1904_v60, %v1903_v39  ;;  %v1919_v6 = vsel %vm686_vm4, %v1918_v61, %v1917_v19  ;;  %v2110_v7 = vsel %vm686_vm4, %v2109_v0, %v2108_v63  ;;  %v250_v39 = vld [vmem:[%s2677_s15 + $0xb0] sm:$0xff] }
  0xbb   : > { %2495 = vmatmul.msk.f32.gmra.mxu0 %vm274_vm0, %v249_v59  ;;  %2527 = vmatmul.msk.f32.gmra.mxu1 %vm274_vm0, %v249_v59  ;;  %v688_v9 = vrot.slane %v404_v1, 4  ;;  %v705_v10 = vrot.slane %v2920_v2, 4  ;;  %v884_v11 = vrot.slane %v404_v1, 3  ;;  %v898_v13 = vrot.slane %v2920_v2, 3 }
  0xbc   : > { %v1085_v14 = vrot.slane %v404_v1, 5  ;;  %v1099_v15 = vrot.slane %v2920_v2, 5  ;;  %v1290_v16 = vrot.slane %v404_v1, 6  ;;  %v1304_v12 = vrot.slane %v2920_v2, 6 }
  0xbd   : > { %v690_v26 = vsel %vm689_vm5, %v688_v9, %v687_v47  ;;  %v706_v62 = vsel %vm689_vm5, %v705_v10, %v704_v48  ;;  %v885_v17 = vsel %vm689_vm5, %v884_v11, %v883_v49  ;;  %v899_v18 = vsel %vm689_vm5, %v898_v13, %v897_v31 }
  0xbe   : > { %v1086_v21 = vsel %vm689_vm5, %v1085_v14, %v1084_v36  ;;  %v1100_v22 = vsel %vm689_vm5, %v1099_v15, %v1098_v41  ;;  %v1291_v28 = vsel %vm689_vm5, %v1290_v16, %v1289_v50  ;;  %v1305_v23 = vsel %vm689_vm5, %v1304_v12, %v1303_v51 }
  0xbf   : > { %v1495_v24 = vrot.slane %v404_v1, 7  ;;  %v1509_v29 = vrot.slane %v2920_v2, 7  ;;  %v1701_v33 = vsel %vm689_vm5, %v404_v1, %v1700_v3  ;;  %v1715_v35 = vsel %vm689_vm5, %v2920_v2, %v1714_v4 }
  0xc0   : > { %v406_v37 = vpop.f32.mrf.mxu0  ;;  %v519_v38 = vpop.f32.mrf.mxu1  ;;  %v1906_v19 = vrot.slane %v404_v1, 1  ;;  %v1920_v30 = vrot.slane %v2920_v2, 1  ;;  %v2111_v20 = vrot.slane %v404_v1, 2  ;;  %v2122_v48 = vsel %vm683_vm3, %v2121_v32, %v2120_v8 }
  0xc1   : > { %v407_v40 = vadd.f32 %v406_v37, %v2730_v25  ;;  %v2954_v42 = vadd.f32 %v519_v38, %v2732_v27  ;;  %v1496_v43 = vsel %vm689_vm5, %v1495_v24, %v1494_v53  ;;  %v1510_v44 = vsel %vm689_vm5, %v1509_v29, %v1508_v54 }
  0xc2   : > { %v1907_v45 = vsel %vm689_vm5, %v1906_v19, %v1905_v5  ;;  %v1921_v46 = vsel %vm689_vm5, %v1920_v30, %v1919_v6  ;;  %v2112_v47 = vsel %vm689_vm5, %v2111_v20, %v2110_v7  ;;  %v251_v6 = vld [vmem:[%s2677_s15 + $0xb8] sm:$0xff]  ;;  %v2123_v10 = vrot.slane %v2889_v34, 3 }
  0xc3   : > { %2496 = vmatmul.msk.f32.gmra.mxu0 %vm274_vm0, %v250_v39  ;;  %2528 = vmatmul.msk.f32.gmra.mxu1 %vm274_vm0, %v250_v39  ;;  %v691_v52 = vrot.slane %v407_v40, 3  ;;  %v707_v49 = vrot.slane %v2954_v42, 3  ;;  %v886_v31 = vrot.slane %v407_v40, 2  ;;  %v900_v36 = vrot.slane %v2954_v42, 2 }
  0xc4   : > { %v1087_v41 = vrot.slane %v407_v40, 4  ;;  %v1101_v50 = vrot.slane %v2954_v42, 4  ;;  %v1292_v51 = vrot.slane %v407_v40, 5  ;;  %v1306_v53 = vrot.slane %v2954_v42, 5 }
  0xc5   : > { %v693_v54 = vsel %vm692_vm6, %v691_v52, %v690_v26  ;;  %v708_v55 = vsel %vm692_vm6, %v707_v49, %v706_v62  ;;  %v887_v56 = vsel %vm692_vm6, %v886_v31, %v885_v17  ;;  %v901_v57 = vsel %vm692_vm6, %v900_v36, %v899_v18 }
  0xc6   : > { %v1088_v58 = vsel %vm692_vm6, %v1087_v41, %v1086_v21  ;;  %v1102_v59 = vsel %vm692_vm6, %v1101_v50, %v1100_v22  ;;  %v1293_v60 = vsel %vm692_vm6, %v1292_v51, %v1291_v28  ;;  %v1307_v61 = vsel %vm692_vm6, %v1306_v53, %v1305_v23 }
  0xc7   : > { %v1497_v63 = vrot.slane %v407_v40, 6  ;;  %v1511_v0 = vrot.slane %v2954_v42, 6  ;;  %v1702_v1 = vrot.slane %v407_v40, 7  ;;  %v1716_v3 = vrot.slane %v2954_v42, 7 }
  0xc8   : > { %v409_v4 = vpop.f32.mrf.mxu0  ;;  %v522_v5 = vpop.f32.mrf.mxu1  ;;  %v1908_v7 = vsel %vm692_vm6, %v407_v40, %v1907_v45  ;;  %v1922_v8 = vsel %vm692_vm6, %v2954_v42, %v1921_v46  ;;  %v2113_v9 = vrot.slane %v407_v40, 1  ;;  %v2124_v62 = vsel %vm686_vm4, %v2123_v10, %v2122_v48  ;;  %v252_v46 = vld [vmem:[%s2677_s15 + $0xc0] sm:$0xff] }
  0xc9   : > { %v410_v11 = vadd.f32 %v409_v4, %v2730_v25  ;;  %v2985_v13 = vadd.f32 %v522_v5, %v2732_v27  ;;  %v1498_v14 = vsel %vm692_vm6, %v1497_v63, %v1496_v43  ;;  %v1512_v15 = vsel %vm692_vm6, %v1511_v0, %v1510_v44 }
  0xca   : > { %v1703_v16 = vsel %vm692_vm6, %v1702_v1, %v1701_v33  ;;  %v1717_v12 = vsel %vm692_vm6, %v1716_v3, %v1715_v35  ;;  %v2114_v26 = vsel %vm692_vm6, %v2113_v9, %v2112_v47  ;;  %v253_v3 = vld [vmem:[%s2677_s15 + $0xc8] sm:$0xff] }
  0xcb   : > { %2497 = vmatmul.msk.f32.gmra.mxu0 %vm274_vm0, %v251_v6  ;;  %2529 = vmatmul.msk.f32.gmra.mxu1 %vm274_vm0, %v251_v6  ;;  %v694_v34 = vrot.slane %v410_v11, 2  ;;  %v709_v17 = vrot.slane %v2985_v13, 2  ;;  %v888_v18 = vrot.slane %v410_v11, 1  ;;  %v902_v21 = vrot.slane %v2985_v13, 1 }
  0xcc   : > { %v1089_v22 = vrot.slane %v410_v11, 3  ;;  %v1103_v28 = vrot.slane %v2985_v13, 3  ;;  %v1294_v23 = vrot.slane %v410_v11, 4  ;;  %v1308_v24 = vrot.slane %v2985_v13, 4 }
  0xcd   : > { %v696_v29 = vsel %vm695_vm7, %v694_v34, %v693_v54  ;;  %v710_v33 = vsel %vm695_vm7, %v709_v17, %v708_v55  ;;  %v3002_v35 = vsel %vm695_vm7, %v888_v18, %v887_v56  ;;  %v3005_v37 = vsel %vm695_vm7, %v902_v21, %v901_v57 }
  0xce   : > { %834 = vmatmul.f32.vlgmr.msra.gmra.mxu2 %v696_v29  ;;  %863 = vmatmul.f32.vlgmr.msra.gmra.mxu3 %v710_v33  ;;  %v3008_v38 = vsel %vm695_vm7, %v1089_v22, %v1088_v58  ;;  %v3011_v39 = vsel %vm695_vm7, %v1103_v28, %v1102_v59  ;;  %v3014_v19 = vsel %vm695_vm7, %v1294_v23, %v1293_v60  ;;  %v1499_v30 = vrot.slane %v410_v11, 5 }
  0xcf   : > { %v3017_v20 = vsel %vm695_vm7, %v1308_v24, %v1307_v61  ;;  %v1513_v32 = vrot.slane %v2985_v13, 5  ;;  %v1704_v40 = vrot.slane %v410_v11, 6  ;;  %v1718_v43 = vrot.slane %v2985_v13, 6 }
  0xd0   : > { %3897 = vst [vmem:[#allocation2_spill] sm:$0xff] %v3017_v20  ;;  %v412_v44 = vpop.f32.mrf.mxu0  ;;  %v525_v45 = vpop.f32.mrf.mxu1  ;;  %v3023_v47 = vsel %vm695_vm7, %v1499_v30, %v1498_v14  ;;  %v1909_v48 = vrot.slane %v410_v11, 7  ;;  %v1923_v52 = vrot.slane %v2985_v13, 7  ;;  %v3027_v49 = vsel %vm695_vm7, %v410_v11, %v2114_v26 }
  0xd1   : > { %3898 = vst [vmem:[#allocation3_spill] sm:$0xff] %v3023_v47  ;;  %v3030_v31 = vadd.f32 %v412_v44, %v2730_v25  ;;  %v3033_v36 = vadd.f32 %v525_v45, %v2732_v27  ;;  %v3036_v41 = vsel %vm695_vm7, %v1513_v32, %v1512_v15  ;;  %v3039_v50 = vsel %vm695_vm7, %v1704_v40, %v1703_v16 }
  0xd2   : > { %3899 = vst [vmem:[#allocation4_spill] sm:$0xff] %v3027_v49  ;;  %v3042_v51 = vsel %vm695_vm7, %v1718_v43, %v1717_v12  ;;  %v3045_v53 = vsel %vm695_vm7, %v1909_v48, %v1908_v7  ;;  %v3048_v54 = vsel %vm695_vm7, %v1923_v52, %v1922_v8  ;;  %v2125_v55 = vrot.slane %v2920_v2, 2  ;;  %v254_v52 = vld [vmem:[%s2677_s15 + $0xd0] sm:$0xff] }
  0xd3   : > { %3900 = vst [vmem:[#allocation5_spill] sm:$0xff] %v3036_v41  ;;  %2498 = vmatmul.msk.f32.gmra.mxu0 %vm274_vm0, %v252_v46  ;;  %2530 = vmatmul.msk.f32.gmra.mxu1 %vm274_vm0, %v252_v46  ;;  %v711_v56 = vrot.slane %v3030_v31, 1  ;;  %v725_v57 = vrot.slane %v3033_v36, 1  ;;  %v2127_v59 = vrot.slane %v2954_v42, 1  ;;  %v1105_v60 = vrot.slane %v3030_v31, 2 }
  0xd4   : > { %3901 = vst [vmem:[#allocation6_spill] sm:$0xff] %v3039_v50  ;;  %v2126_v58 = vsel %vm689_vm5, %v2125_v55, %v2124_v62  ;;  %v1119_v61 = vrot.slane %v3033_v36, 2  ;;  %v1310_v63 = vrot.slane %v3030_v31, 3  ;;  %v1324_v2 = vrot.slane %v3033_v36, 3 }
  0xd5   : > { %3902 = vst [vmem:[#allocation7_spill] sm:$0xff] %v3042_v51  ;;  %v1515_v4 = vrot.slane %v3030_v31, 4  ;;  %v1529_v5 = vrot.slane %v3033_v36, 4  ;;  %v1720_v6 = vrot.slane %v3030_v31, 5  ;;  %v2128_v7 = vsel %vm692_vm6, %v2127_v59, %v2126_v58 }
  0xd6   : > { %3903 = vst [vmem:[#allocation8_spill] sm:$0xff] %v3045_v53  ;;  %v1734_v9 = vrot.slane %v3033_v36, 5  ;;  %v3071_v10 = vsel %vm695_vm7, %v2985_v13, %v2128_v7  ;;  %v1925_v11 = vrot.slane %v3030_v31, 6  ;;  %v1939_v14 = vrot.slane %v3033_v36, 6 }
  0xd7   : > { %3904 = vst [vmem:[#allocation9_spill] sm:$0xff] %v3048_v54  ;;  %v2130_v15 = vrot.slane %v3030_v31, 7  ;;  %v2144_v16 = vrot.slane %v3033_v36, 7 }
  0xd8   : > { %v415_v0 = vpop.f32.mrf.mxu0  ;;  %v528_v1 = vpop.f32.mrf.mxu1  ;;  %3905 = vst [vmem:[#allocation10_spill] sm:$0xff] %v3071_v10 }
  0xd9   : > { %v416_v42 = vadd.f32 %v415_v0, %v2730_v25  ;;  %v529_v8 = vadd.f32 %v528_v1, %v2732_v27 }
  0xdb   : > { %2499 = vmatmul.msk.f32.gmra.mxu0 %vm274_vm0, %v253_v3  ;;  %2531 = vmatmul.msk.f32.gmra.mxu1 %vm274_vm0, %v253_v3  ;;  %v712_v12 = vsel %vm677_vm1, %v416_v42, %v711_v56  ;;  %v726_v26 = vsel %vm677_vm1, %v529_v8, %v725_v57  ;;  %v904_v62 = vrot.slane %v416_v42, 7  ;;  %v918_v34 = vrot.slane %v529_v8, 7 }
  0xdc   : > { %v1106_v13 = vrot.slane %v416_v42, 1  ;;  %v1120_v17 = vrot.slane %v529_v8, 1  ;;  %v1311_v18 = vrot.slane %v416_v42, 2  ;;  %v1325_v21 = vrot.slane %v529_v8, 2 }
  0xdd   : > { %v905_v22 = vsel %vm677_vm1, %v904_v62, %v3030_v31  ;;  %v919_v28 = vsel %vm677_vm1, %v918_v34, %v3033_v36  ;;  %v1516_v23 = vrot.slane %v416_v42, 3  ;;  %v1530_v24 = vrot.slane %v529_v8, 3 }
  0xde   : > { %v1107_v29 = vsel %vm677_vm1, %v1106_v13, %v1105_v60  ;;  %v1121_v33 = vsel %vm677_vm1, %v1120_v17, %v1119_v61  ;;  %v1312_v30 = vsel %vm677_vm1, %v1311_v18, %v1310_v63  ;;  %v1326_v32 = vsel %vm677_vm1, %v1325_v21, %v1324_v2 }
  0xdf   : > { %v1517_v40 = vsel %vm677_vm1, %v1516_v23, %v1515_v4  ;;  %v1531_v43 = vsel %vm677_vm1, %v1530_v24, %v1529_v5  ;;  %v1721_v44 = vrot.slane %v416_v42, 4  ;;  %v1735_v45 = vrot.slane %v529_v8, 4 }
  0xe0   : > { %v418_v46 = vpop.f32.mrf.mxu0  ;;  %v531_v48 = vpop.f32.mrf.mxu1  ;;  %v1926_v31 = vrot.slane %v416_v42, 5  ;;  %v1940_v36 = vrot.slane %v529_v8, 5  ;;  %v2131_v55 = vrot.slane %v416_v42, 6  ;;  %v2145_v56 = vrot.slane %v529_v8, 6 }
  0xe1   : > { %v419_v57 = vadd.f32 %v418_v46, %v2730_v25  ;;  %v532_v58 = vadd.f32 %v531_v48, %v2732_v27  ;;  %v1722_v59 = vsel %vm677_vm1, %v1721_v44, %v1720_v6  ;;  %v1736_v60 = vsel %vm677_vm1, %v1735_v45, %v1734_v9 }
  0xe2   : > { %v1927_v61 = vsel %vm677_vm1, %v1926_v31, %v1925_v11  ;;  %v1941_v63 = vsel %vm677_vm1, %v1940_v36, %v1939_v14  ;;  %v2132_v2 = vsel %vm677_vm1, %v2131_v55, %v2130_v15  ;;  %v2146_v0 = vsel %vm677_vm1, %v2145_v56, %v2144_v16 }
  0xe3   : > { %2500 = vmatmul.msk.f32.gmra.mxu0 %vm274_vm0, %v254_v52  ;;  %2532 = vmatmul.msk.f32.gmra.mxu1 %vm274_vm0, %v254_v52  ;;  %v713_v1 = vrot.slane %v419_v57, 7  ;;  %v727_v3 = vrot.slane %v532_v58, 7  ;;  %v906_v4 = vrot.slane %v419_v57, 6  ;;  %v920_v5 = vrot.slane %v532_v58, 6 }
  0xe4   : > { %v1108_v6 = vsel %vm680_vm2, %v419_v57, %v1107_v29  ;;  %v1122_v7 = vsel %vm680_vm2, %v532_v58, %v1121_v33  ;;  %v1313_v42 = vrot.slane %v419_v57, 1  ;;  %v1327_v8 = vrot.slane %v532_v58, 1  ;;  %v255_v33 = vld [vmem:[%s2677_s15 + $0xd8] sm:$0xff] }
  0xe5   : > { %v714_v9 = vsel %vm680_vm2, %v713_v1, %v712_v12  ;;  %v728_v11 = vsel %vm680_vm2, %v727_v3, %v726_v26  ;;  %v907_v14 = vsel %vm680_vm2, %v906_v4, %v905_v22  ;;  %v921_v15 = vsel %vm680_vm2, %v920_v5, %v919_v28 }
  0xe6   : > { %v1314_v16 = vsel %vm680_vm2, %v1313_v42, %v1312_v30  ;;  %v1328_v62 = vsel %vm680_vm2, %v1327_v8, %v1326_v32  ;;  %v1518_v34 = vrot.slane %v419_v57, 2  ;;  %v1532_v13 = vrot.slane %v532_v58, 2 }
  0xe7   : > { %v1723_v17 = vrot.slane %v419_v57, 3  ;;  %v1737_v18 = vrot.slane %v532_v58, 3  ;;  %v1928_v21 = vrot.slane %v419_v57, 4  ;;  %v1942_v23 = vrot.slane %v532_v58, 4 }
  0xe8   : > { %v421_v24 = vpop.f32.mrf.mxu0  ;;  %v534_v29 = vpop.f32.mrf.mxu1  ;;  %v1519_v12 = vsel %vm680_vm2, %v1518_v34, %v1517_v40  ;;  %v1533_v26 = vsel %vm680_vm2, %v1532_v13, %v1531_v43  ;;  %v2133_v22 = vrot.slane %v419_v57, 5  ;;  %v2147_v44 = vrot.slane %v532_v58, 5  ;;  %v256_v13 = vld [vmem:[%s2677_s15 + $0xe0] sm:$0xff] }
  0xe9   : > { %v422_v28 = vadd.f32 %v421_v24, %v2730_v25  ;;  %v535_v30 = vadd.f32 %v534_v29, %v2732_v27  ;;  %v1724_v32 = vsel %vm680_vm2, %v1723_v17, %v1722_v59  ;;  %v1738_v45 = vsel %vm680_vm2, %v1737_v18, %v1736_v60 }
  0xea   : > { %v1929_v46 = vsel %vm680_vm2, %v1928_v21, %v1927_v61  ;;  %v1943_v48 = vsel %vm680_vm2, %v1942_v23, %v1941_v63  ;;  %v2134_v52 = vsel %vm680_vm2, %v2133_v22, %v2132_v2  ;;  %v2148_v40 = vsel %vm680_vm2, %v2147_v44, %v2146_v0 }
  0xeb   : > { %2501 = vmatmul.msk.f32.gmra.mxu0 %vm274_vm0, %v255_v33  ;;  %2533 = vmatmul.msk.f32.gmra.mxu1 %vm274_vm0, %v255_v33  ;;  %v715_v43 = vrot.slane %v422_v28, 6  ;;  %v729_v31 = vrot.slane %v535_v30, 6  ;;  %v908_v36 = vrot.slane %v422_v28, 5  ;;  %v922_v55 = vrot.slane %v535_v30, 5 }
  0xec   : > { %v1109_v56 = vrot.slane %v422_v28, 7  ;;  %v1123_v57 = vrot.slane %v535_v30, 7  ;;  %v1315_v58 = vsel %vm683_vm3, %v422_v28, %v1314_v16  ;;  %v1329_v59 = vsel %vm683_vm3, %v535_v30, %v1328_v62 }
  0xed   : > { %v716_v60 = vsel %vm683_vm3, %v715_v43, %v714_v9  ;;  %v730_v61 = vsel %vm683_vm3, %v729_v31, %v728_v11  ;;  %v909_v63 = vsel %vm683_vm3, %v908_v36, %v907_v14  ;;  %v923_v2 = vsel %vm683_vm3, %v922_v55, %v921_v15 }
  0xee   : > { %v1110_v0 = vsel %vm683_vm3, %v1109_v56, %v1108_v6  ;;  %v1124_v1 = vsel %vm683_vm3, %v1123_v57, %v1122_v7  ;;  %v1520_v3 = vrot.slane %v422_v28, 1  ;;  %v1534_v4 = vrot.slane %v535_v30, 1 }
  0xef   : > { %v1725_v5 = vrot.slane %v422_v28, 2  ;;  %v1739_v42 = vrot.slane %v535_v30, 2  ;;  %v1930_v8 = vrot.slane %v422_v28, 3  ;;  %v1944_v16 = vrot.slane %v535_v30, 3 }
  0xf0   : > { %v424_v34 = vpop.f32.mrf.mxu0  ;;  %v537_v62 = vpop.f32.mrf.mxu1  ;;  %v1521_v9 = vsel %vm683_vm3, %v1520_v3, %v1519_v12  ;;  %v1535_v11 = vsel %vm683_vm3, %v1534_v4, %v1533_v26  ;;  %v2135_v14 = vrot.slane %v422_v28, 4  ;;  %v2149_v17 = vrot.slane %v535_v30, 4  ;;  %v257_v4 = vld [vmem:[%s2677_s15 + $0xe8] sm:$0xff] }
  0xf1   : > { %v425_v15 = vadd.f32 %v424_v34, %v2730_v25  ;;  %v538_v6 = vadd.f32 %v537_v62, %v2732_v27  ;;  %v1726_v7 = vsel %vm683_vm3, %v1725_v5, %v1724_v32  ;;  %v1740_v18 = vsel %vm683_vm3, %v1739_v42, %v1738_v45 }
  0xf2   : > { %v1931_v21 = vsel %vm683_vm3, %v1930_v8, %v1929_v46  ;;  %v1945_v23 = vsel %vm683_vm3, %v1944_v16, %v1943_v48  ;;  %v2136_v24 = vsel %vm683_vm3, %v2135_v14, %v2134_v52  ;;  %v2150_v29 = vsel %vm683_vm3, %v2149_v17, %v2148_v40 }
  0xf3   : > { %2502 = vmatmul.msk.f32.gmra.mxu0 %vm274_vm0, %v256_v13  ;;  %2534 = vmatmul.msk.f32.gmra.mxu1 %vm274_vm0, %v256_v13  ;;  %v717_v33 = vrot.slane %v425_v15, 5  ;;  %v731_v12 = vrot.slane %v538_v6, 5  ;;  %v910_v26 = vrot.slane %v425_v15, 4  ;;  %v924_v22 = vrot.slane %v538_v6, 4 }
  0xf4   : > { %v1111_v44 = vrot.slane %v425_v15, 6  ;;  %v1125_v28 = vrot.slane %v538_v6, 6  ;;  %v1316_v30 = vrot.slane %v425_v15, 7  ;;  %v1330_v32 = vrot.slane %v538_v6, 7 }
  0xf5   : > { %v718_v45 = vsel %vm686_vm4, %v717_v33, %v716_v60  ;;  %v732_v46 = vsel %vm686_vm4, %v731_v12, %v730_v61  ;;  %v911_v48 = vsel %vm686_vm4, %v910_v26, %v909_v63  ;;  %v925_v52 = vsel %vm686_vm4, %v924_v22, %v923_v2 }
  0xf6   : > { %v1112_v40 = vsel %vm686_vm4, %v1111_v44, %v1110_v0  ;;  %v1126_v43 = vsel %vm686_vm4, %v1125_v28, %v1124_v1  ;;  %v1317_v31 = vsel %vm686_vm4, %v1316_v30, %v1315_v58  ;;  %v1331_v36 = vsel %vm686_vm4, %v1330_v32, %v1329_v59 }
  0xf7   : > { %v1522_v55 = vsel %vm686_vm4, %v425_v15, %v1521_v9  ;;  %v1536_v56 = vsel %vm686_vm4, %v538_v6, %v1535_v11  ;;  %v1727_v57 = vrot.slane %v425_v15, 1  ;;  %v1741_v60 = vrot.slane %v538_v6, 1 }
  0xf8   : > { %v427_v3 = vpop.f32.mrf.mxu0  ;;  %v540_v61 = vpop.f32.mrf.mxu1  ;;  %v1932_v63 = vrot.slane %v425_v15, 2  ;;  %v1946_v5 = vrot.slane %v538_v6, 2  ;;  %v2137_v2 = vrot.slane %v425_v15, 3  ;;  %v2151_v42 = vrot.slane %v538_v6, 3 }
  0xf9   : > { %v428_v0 = vadd.f32 %v427_v3, %v2730_v25  ;;  %v541_v1 = vadd.f32 %v540_v61, %v2732_v27  ;;  %v1728_v58 = vsel %vm686_vm4, %v1727_v57, %v1726_v7  ;;  %v1742_v59 = vsel %vm686_vm4, %v1741_v60, %v1740_v18 }
  0xfa   : > { %v1933_v8 = vsel %vm686_vm4, %v1932_v63, %v1931_v21  ;;  %v1947_v16 = vsel %vm686_vm4, %v1946_v5, %v1945_v23  ;;  %v2138_v34 = vsel %vm686_vm4, %v2137_v2, %v2136_v24  ;;  %v2152_v62 = vsel %vm686_vm4, %v2151_v42, %v2150_v29 }
  0xfb   : > { %2503 = vmatmul.msk.f32.gmra.mxu0 %vm274_vm0, %v257_v4  ;;  %2535 = vmatmul.msk.f32.gmra.mxu1 %vm274_vm0, %v257_v4  ;;  %v719_v13 = vrot.slane %v428_v0, 4  ;;  %v733_v9 = vrot.slane %v541_v1, 4  ;;  %v912_v11 = vrot.slane %v428_v0, 3  ;;  %v926_v14 = vrot.slane %v541_v1, 3 }
  0xfc   : > { %v1113_v17 = vrot.slane %v428_v0, 5  ;;  %v1127_v15 = vrot.slane %v541_v1, 5  ;;  %v1318_v6 = vrot.slane %v428_v0, 6  ;;  %v1332_v7 = vrot.slane %v541_v1, 6 }
  0xfd   : > { %v720_v18 = vsel %vm689_vm5, %v719_v13, %v718_v45  ;;  %v734_v21 = vsel %vm689_vm5, %v733_v9, %v732_v46  ;;  %v913_v23 = vsel %vm689_vm5, %v912_v11, %v911_v48  ;;  %v927_v24 = vsel %vm689_vm5, %v926_v14, %v925_v52  ;;  %v258_v46 = vld [vmem:[%s2677_s15 + $0xf0] sm:$0xff] }
  0xfe   : > { %v1114_v29 = vsel %vm689_vm5, %v1113_v17, %v1112_v40  ;;  %v1128_v33 = vsel %vm689_vm5, %v1127_v15, %v1126_v43  ;;  %v1319_v12 = vsel %vm689_vm5, %v1318_v6, %v1317_v31  ;;  %v1333_v26 = vsel %vm689_vm5, %v1332_v7, %v1331_v36 }
  0xff   : > { %v1523_v22 = vrot.slane %v428_v0, 7  ;;  %v1537_v44 = vrot.slane %v541_v1, 7  ;;  %v1729_v28 = vsel %vm689_vm5, %v428_v0, %v1728_v58  ;;  %v1743_v30 = vsel %vm689_vm5, %v541_v1, %v1742_v59 }
 0x100   : > { %v430_v32 = vpop.f32.mrf.mxu0  ;;  %v543_v45 = vpop.f32.mrf.mxu1  ;;  %v1934_v48 = vrot.slane %v428_v0, 1  ;;  %v1948_v57 = vrot.slane %v541_v1, 1  ;;  %v2139_v52 = vrot.slane %v428_v0, 2  ;;  %v2153_v60 = vrot.slane %v541_v1, 2 }
 0x101   : > { %v431_v40 = vadd.f32 %v430_v32, %v2730_v25  ;;  %v544_v43 = vadd.f32 %v543_v45, %v2732_v27  ;;  %v1524_v31 = vsel %vm689_vm5, %v1523_v22, %v1522_v55  ;;  %v1538_v36 = vsel %vm689_vm5, %v1537_v44, %v1536_v56  ;;  %v259_v22 = vld [vmem:[%s2677_s15 + $0xf8] sm:$0xff]  ;;  %s2609_s15 = smov 4  }
 0x102   : > { %v1935_v3 = vsel %vm689_vm5, %v1934_v48, %v1933_v8  ;;  %v1949_v61 = vsel %vm689_vm5, %v1948_v57, %v1947_v16  ;;  %v2140_v4 = vsel %vm689_vm5, %v2139_v52, %v2138_v34  ;;  %v2154_v63 = vsel %vm689_vm5, %v2153_v60, %v2152_v62 }
 0x103   : > { %2504 = vmatmul.msk.f32.gmra.mxu0 %vm274_vm0, %v258_v46  ;;  %2536 = vmatmul.msk.f32.gmra.mxu1 %vm274_vm0, %v258_v46  ;;  %v721_v5 = vrot.slane %v431_v40, 3  ;;  %v735_v2 = vrot.slane %v544_v43, 3  ;;  %v914_v42 = vrot.slane %v431_v40, 2  ;;  %v928_v0 = vrot.slane %v544_v43, 2 }
 0x104   : > { %v1115_v1 = vrot.slane %v431_v40, 4  ;;  %v1129_v55 = vrot.slane %v544_v43, 4  ;;  %v1320_v58 = vrot.slane %v431_v40, 5  ;;  %v1334_v56 = vrot.slane %v544_v43, 5 }
 0x105   : > { %v722_v59 = vsel %vm692_vm6, %v721_v5, %v720_v18  ;;  %v736_v8 = vsel %vm692_vm6, %v735_v2, %v734_v21  ;;  %v915_v16 = vsel %vm692_vm6, %v914_v42, %v913_v23  ;;  %v929_v34 = vsel %vm692_vm6, %v928_v0, %v927_v24 }
 0x106   : > { %v1116_v62 = vsel %vm692_vm6, %v1115_v1, %v1114_v29  ;;  %v1130_v13 = vsel %vm692_vm6, %v1129_v55, %v1128_v33  ;;  %v1321_v9 = vsel %vm692_vm6, %v1320_v58, %v1319_v12  ;;  %v1335_v11 = vsel %vm692_vm6, %v1334_v56, %v1333_v26 }
 0x107   : > { %v1525_v14 = vrot.slane %v431_v40, 6  ;;  %v1539_v17 = vrot.slane %v544_v43, 6  ;;  %v1730_v15 = vrot.slane %v431_v40, 7  ;;  %v1744_v6 = vrot.slane %v544_v43, 7 }
 0x108   : > { %v433_v7 = vpop.f32.mrf.mxu0  ;;  %v546_v18 = vpop.f32.mrf.mxu1  ;;  %v1936_v21 = vsel %vm692_vm6, %v431_v40, %v1935_v3  ;;  %v1950_v23 = vsel %vm692_vm6, %v544_v43, %v1949_v61  ;;  %v2141_v24 = vrot.slane %v431_v40, 1  ;;  %v2155_v44 = vrot.slane %v544_v43, 1 }
 0x109   : > { %v434_v29 = vadd.f32 %v433_v7, %v2730_v25  ;;  %v547_v33 = vadd.f32 %v546_v18, %v2732_v27  ;;  %v1526_v12 = vsel %vm692_vm6, %v1525_v14, %v1524_v31  ;;  %v1540_v26 = vsel %vm692_vm6, %v1539_v17, %v1538_v36 }
 0x10a   : > { %v1731_v32 = vsel %vm692_vm6, %v1730_v15, %v1729_v28  ;;  %v1745_v45 = vsel %vm692_vm6, %v1744_v6, %v1743_v30  ;;  %v2142_v46 = vsel %vm692_vm6, %v2141_v24, %v2140_v4  ;;  %v2156_v48 = vsel %vm692_vm6, %v2155_v44, %v2154_v63 }
 0x10b   : > { %2505 = vmatmul.msk.f32.gmra.mxu0 %vm274_vm0, %v259_v22  ;;  %2537 = vmatmul.msk.f32.gmra.mxu1 %vm274_vm0, %v259_v22  ;;  %v723_v57 = vrot.slane %v434_v29, 2  ;;  %v737_v52 = vrot.slane %v547_v33, 2  ;;  %v916_v60 = vrot.slane %v434_v29, 1  ;;  %v930_v40 = vrot.slane %v547_v33, 1 }
 0x10c   : > { %v1117_v43 = vrot.slane %v434_v29, 3  ;;  %v1131_v31 = vrot.slane %v547_v33, 3  ;;  %v1322_v3 = vrot.slane %v434_v29, 4  ;;  %v1336_v36 = vrot.slane %v547_v33, 4 }
 0x10d   : > { %v724_v28 = vsel %vm695_vm7, %v723_v57, %v722_v59  ;;  %v738_v30 = vsel %vm695_vm7, %v737_v52, %v736_v8  ;;  %v3210_v61 = vsel %vm695_vm7, %v916_v60, %v915_v16  ;;  %v3213_v4 = vsel %vm695_vm7, %v930_v40, %v929_v34 }
 0x10e   : > { %837 = vmatmul.f32.gmra.mxu2 %v724_v28  ;;  %866 = vmatmul.f32.gmra.mxu3 %v738_v30  ;;  %v3216_v63 = vsel %vm695_vm7, %v1117_v43, %v1116_v62  ;;  %v3219_v5 = vsel %vm695_vm7, %v1131_v31, %v1130_v13  ;;  %v3222_v2 = vsel %vm695_vm7, %v1322_v3, %v1321_v9  ;;  %v1527_v42 = vrot.slane %v434_v29, 5 }
 0x10f   : > { %3906 = vst [vmem:[#allocation11_spill] sm:$0xff] %v3222_v2  ;;  %v3225_v0 = vsel %vm695_vm7, %v1336_v36, %v1335_v11  ;;  %v1541_v1 = vrot.slane %v547_v33, 5  ;;  %v1732_v55 = vrot.slane %v434_v29, 6  ;;  %v1746_v58 = vrot.slane %v547_v33, 6 }
 0x110   : > { %3907 = vst [vmem:[#allocation12_spill] sm:$0xff] %v3225_v0  ;;  %v436_v56 = vpop.f32.mrf.mxu0  ;;  %v549_v59 = vpop.f32.mrf.mxu1  ;;  %v3228_v8 = vsel %vm695_vm7, %v1527_v42, %v1526_v12  ;;  %v1937_v16 = vrot.slane %v434_v29, 7  ;;  %v1951_v34 = vrot.slane %v547_v33, 7  ;;  %v3231_v62 = vsel %vm695_vm7, %v434_v29, %v2142_v46 }
 0x111   : > { %3908 = vst [vmem:[#allocation13_spill] sm:$0xff] %v3228_v8  ;;  %v3234_v13 = vsel %vm695_vm7, %v1541_v1, %v1540_v26  ;;  %v3237_v9 = vsel %vm695_vm7, %v1732_v55, %v1731_v32  ;;  %v3240_v11 = vsel %vm695_vm7, %v1746_v58, %v1745_v45  ;;  %v3249_v15 = vsel %vm695_vm7, %v547_v33, %v2156_v48  ;;  %v2548_v8 = vld [vmem:[%s3894_s3 + $0x32] ss:$8 sm:$0x3] }
 0x112   : > { %3909 = vst [vmem:[#allocation14_spill] sm:$0xff] %v3231_v62  ;;  %v3243_v14 = vsel %vm695_vm7, %v1937_v16, %v1936_v21  ;;  %v3246_v17 = vsel %vm695_vm7, %v1951_v34, %v1950_v23  ;;  %v437_v6 = vadd.f32 %v436_v56, %v2730_v25  ;;  %v550_v7 = vadd.f32 %v549_v59, %v2732_v27 }
 0x113   : > { %3910 = vst [vmem:[#allocation15_spill] sm:$0xff] %v3234_v13  ;;  %v2547_v13 = vld [vmem:[%s3894_s3 + $0x22] ss:$8 sm:$0x3] }
 0x114   : > { %3911 = vst [vmem:[#allocation16_spill] sm:$0xff] %v3237_v9  ;;  %v739_v18 = vrot.slane %v437_v6, 1  ;;  %v753_v22 = vrot.slane %v550_v7, 1  ;;  %v1133_v24 = vrot.slane %v437_v6, 2  ;;  %v1147_v44 = vrot.slane %v550_v7, 2 }
 0x115   : > { %3912 = vst [vmem:[#allocation17_spill] sm:$0xff] %v3240_v11  ;;  %v1338_v26 = vrot.slane %v437_v6, 3  ;;  %v1352_v32 = vrot.slane %v550_v7, 3  ;;  %v1543_v21 = vrot.slane %v437_v6, 4  ;;  %v1557_v45 = vrot.slane %v550_v7, 4 }
 0x116   : > { %3913 = vst [vmem:[#allocation18_spill] sm:$0xff] %v3243_v14  ;;  %v1748_v33 = vrot.slane %v437_v6, 5  ;;  %v1762_v48 = vrot.slane %v550_v7, 5  ;;  %v1953_v57 = vrot.slane %v437_v6, 6  ;;  %v1967_v52 = vrot.slane %v550_v7, 6 }
 0x117   : > { %3914 = vst [vmem:[#allocation19_spill] sm:$0xff] %v3246_v17  ;;  %v2158_v60 = vrot.slane %v437_v6, 7  ;;  %v2172_v40 = vrot.slane %v550_v7, 7 }
 0x118   : > { %3915 = vst [vmem:[#allocation20_spill] sm:$0xff] %v3249_v15  ;;  %v439_v29 = vpop.f32.mrf.mxu0  ;;  %v552_v12 = vpop.f32.mrf.mxu1 }
 0x119   : > { %v440_v23 = vadd.f32 %v439_v29, %v2730_v25  ;;  %v553_v46 = vadd.f32 %v552_v12, %v2732_v27 }
 0x11b   : > { %v740_v43 = vsel %vm677_vm1, %v440_v23, %v739_v18  ;;  %v754_v31 = vsel %vm677_vm1, %v553_v46, %v753_v22  ;;  %v932_v3 = vrot.slane %v440_v23, 7  ;;  %v946_v36 = vrot.slane %v553_v46, 7 }
 0x11c   : > { %v1134_v28 = vrot.slane %v440_v23, 1  ;;  %v1148_v30 = vrot.slane %v553_v46, 1  ;;  %v1339_v42 = vrot.slane %v440_v23, 2  ;;  %v1353_v1 = vrot.slane %v553_v46, 2 }
 0x11d   : > { %v933_v55 = vsel %vm677_vm1, %v932_v3, %v437_v6  ;;  %v947_v58 = vsel %vm677_vm1, %v946_v36, %v550_v7  ;;  %v1544_v56 = vrot.slane %v440_v23, 3  ;;  %v1558_v59 = vrot.slane %v553_v46, 3 }
 0x11e   : > { %v1135_v16 = vsel %vm677_vm1, %v1134_v28, %v1133_v24  ;;  %v1149_v34 = vsel %vm677_vm1, %v1148_v30, %v1147_v44  ;;  %v1340_v18 = vsel %vm677_vm1, %v1339_v42, %v1338_v26  ;;  %v1354_v22 = vsel %vm677_vm1, %v1353_v1, %v1352_v32 }
 0x11f   : > { %v1545_v29 = vsel %vm677_vm1, %v1544_v56, %v1543_v21  ;;  %v1559_v12 = vsel %vm677_vm1, %v1558_v59, %v1557_v45  ;;  %v1749_v15 = vrot.slane %v440_v23, 4  ;;  %v1763_v62 = vrot.slane %v553_v46, 4 }
 0x120   : > { %v442_v10 = vpop.f32.mrf.mxu0  ;;  %v555_v6 = vpop.f32.mrf.mxu1  ;;  %v1954_v3 = vrot.slane %v440_v23, 5  ;;  %v1968_v7 = vrot.slane %v553_v46, 5  ;;  %v2159_v36 = vrot.slane %v440_v23, 6  ;;  %v2173_v49 = vrot.slane %v553_v46, 6 }
 0x121   : > { %v443_v24 = vadd.f32 %v442_v10, %v2730_v25  ;;  %v556_v44 = vadd.f32 %v555_v6, %v2732_v27  ;;  %v1750_v26 = vsel %vm677_vm1, %v1749_v15, %v1748_v33  ;;  %v1764_v32 = vsel %vm677_vm1, %v1763_v62, %v1762_v48 }
 0x122   : > { %v1955_v21 = vsel %vm677_vm1, %v1954_v3, %v1953_v57  ;;  %v1969_v45 = vsel %vm677_vm1, %v1968_v7, %v1967_v52  ;;  %v2160_v28 = vsel %vm677_vm1, %v2159_v36, %v2158_v60  ;;  %v2174_v30 = vsel %vm677_vm1, %v2173_v49, %v2172_v40 }
 0x123   : > { %v741_v42 = vrot.slane %v443_v24, 7  ;;  %v755_v1 = vrot.slane %v556_v44, 7  ;;  %v934_v23 = vrot.slane %v443_v24, 6  ;;  %v948_v46 = vrot.slane %v556_v44, 6 }
 0x124   : > { %v1136_v10 = vsel %vm680_vm2, %v443_v24, %v1135_v16  ;;  %v1150_v56 = vsel %vm680_vm2, %v556_v44, %v1149_v34  ;;  %v1341_v59 = vrot.slane %v443_v24, 1  ;;  %v1355_v15 = vrot.slane %v556_v44, 1 }
 0x125   : > { %v742_v62 = vsel %vm680_vm2, %v741_v42, %v740_v43  ;;  %v756_v33 = vsel %vm680_vm2, %v755_v1, %v754_v31  ;;  %v935_v48 = vsel %vm680_vm2, %v934_v23, %v933_v55  ;;  %v949_v57 = vsel %vm680_vm2, %v948_v46, %v947_v58 }
 0x126   : > { %v1342_v49 = vsel %vm680_vm2, %v1341_v59, %v1340_v18  ;;  %v1356_v52 = vsel %vm680_vm2, %v1355_v15, %v1354_v22  ;;  %v1546_v60 = vrot.slane %v443_v24, 2  ;;  %v1560_v40 = vrot.slane %v556_v44, 2 }
 0x127   : > { %v1751_v6 = vrot.slane %v443_v24, 3  ;;  %v1765_v16 = vrot.slane %v556_v44, 3  ;;  %v1956_v3 = vrot.slane %v443_v24, 4  ;;  %v1970_v34 = vrot.slane %v556_v44, 4 }
 0x128   : > { %v445_v7 = vpop.f32.mrf.mxu0  ;;  %v558_v36 = vpop.f32.mrf.mxu1  ;;  %v1547_v43 = vsel %vm680_vm2, %v1546_v60, %v1545_v29  ;;  %v1561_v31 = vsel %vm680_vm2, %v1560_v40, %v1559_v12  ;;  %v2161_v42 = vrot.slane %v443_v24, 5  ;;  %v2175_v55 = vrot.slane %v556_v44, 5 }
 0x129   : > { %v446_v58 = vadd.f32 %v445_v7, %v2730_v25  ;;  %v559_v18 = vadd.f32 %v558_v36, %v2732_v27  ;;  %v1752_v22 = vsel %vm680_vm2, %v1751_v6, %v1750_v26  ;;  %v1766_v1 = vsel %vm680_vm2, %v1765_v16, %v1764_v32 }
 0x12a   : > { %v1957_v23 = vsel %vm680_vm2, %v1956_v3, %v1955_v21  ;;  %v1971_v46 = vsel %vm680_vm2, %v1970_v34, %v1969_v45  ;;  %v2162_v59 = vsel %vm680_vm2, %v2161_v42, %v2160_v28  ;;  %v2176_v29 = vsel %vm680_vm2, %v2175_v55, %v2174_v30 }
 0x12b   : > { %v743_v15 = vrot.slane %v446_v58, 6  ;;  %v757_v12 = vrot.slane %v559_v18, 6  ;;  %v936_v24 = vrot.slane %v446_v58, 5  ;;  %v950_v44 = vrot.slane %v559_v18, 5 }
 0x12c   : > { %v1137_v60 = vrot.slane %v446_v58, 7  ;;  %v1151_v40 = vrot.slane %v559_v18, 7  ;;  %v1343_v7 = vsel %vm683_vm3, %v446_v58, %v1342_v49  ;;  %v1357_v26 = vsel %vm683_vm3, %v559_v18, %v1356_v52 }
 0x12d   : > { %v744_v32 = vsel %vm683_vm3, %v743_v15, %v742_v62  ;;  %v758_v21 = vsel %vm683_vm3, %v757_v12, %v756_v33  ;;  %v937_v45 = vsel %vm683_vm3, %v936_v24, %v935_v48  ;;  %v951_v28 = vsel %vm683_vm3, %v950_v44, %v949_v57 }
 0x12e   : > { %v1138_v30 = vsel %vm683_vm3, %v1137_v60, %v1136_v10  ;;  %v1152_v6 = vsel %vm683_vm3, %v1151_v40, %v1150_v56  ;;  %v1548_v16 = vrot.slane %v446_v58, 1  ;;  %v1562_v3 = vrot.slane %v559_v18, 1 }
 0x12f   : > { %v1753_v34 = vrot.slane %v446_v58, 2  ;;  %v1767_v36 = vrot.slane %v559_v18, 2  ;;  %v1958_v42 = vrot.slane %v446_v58, 3  ;;  %v1972_v49 = vrot.slane %v559_v18, 3 }
 0x130   : > { %v448_v55 = vpop.f32.mrf.mxu0  ;;  %v561_v52 = vpop.f32.mrf.mxu1  ;;  %v1549_v62 = vsel %vm683_vm3, %v1548_v16, %v1547_v43  ;;  %v1563_v33 = vsel %vm683_vm3, %v1562_v3, %v1561_v31  ;;  %v2163_v15 = vrot.slane %v446_v58, 4  ;;  %v2177_v48 = vrot.slane %v559_v18, 4 }
 0x131   : > { %v449_v57 = vadd.f32 %v448_v55, %v2730_v25  ;;  %v562_v10 = vadd.f32 %v561_v52, %v2732_v27  ;;  %v1754_v56 = vsel %vm683_vm3, %v1753_v34, %v1752_v22  ;;  %v1768_v12 = vsel %vm683_vm3, %v1767_v36, %v1766_v1 }
 0x132   : > { %v1959_v24 = vsel %vm683_vm3, %v1958_v42, %v1957_v23  ;;  %v1973_v44 = vsel %vm683_vm3, %v1972_v49, %v1971_v46  ;;  %v2164_v60 = vsel %vm683_vm3, %v2163_v15, %v2162_v59  ;;  %v2178_v43 = vsel %vm683_vm3, %v2177_v48, %v2176_v29 }
 0x133   : > { %v745_v40 = vrot.slane %v449_v57, 5  ;;  %v759_v31 = vrot.slane %v562_v10, 5  ;;  %v938_v58 = vrot.slane %v449_v57, 4  ;;  %v952_v18 = vrot.slane %v562_v10, 4 }
 0x134   : > { %v1139_v16 = vrot.slane %v449_v57, 6  ;;  %v1153_v3 = vrot.slane %v562_v10, 6  ;;  %v1344_v55 = vrot.slane %v449_v57, 7  ;;  %v1358_v52 = vrot.slane %v562_v10, 7 }
 0x135   : > { %v746_v22 = vsel %vm686_vm4, %v745_v40, %v744_v32  ;;  %v760_v1 = vsel %vm686_vm4, %v759_v31, %v758_v21  ;;  %v939_v23 = vsel %vm686_vm4, %v938_v58, %v937_v45  ;;  %v953_v46 = vsel %vm686_vm4, %v952_v18, %v951_v28 }
 0x136   : > { %v1140_v59 = vsel %vm686_vm4, %v1139_v16, %v1138_v30  ;;  %v1154_v29 = vsel %vm686_vm4, %v1153_v3, %v1152_v6  ;;  %v1345_v34 = vsel %vm686_vm4, %v1344_v55, %v1343_v7  ;;  %v1359_v36 = vsel %vm686_vm4, %v1358_v52, %v1357_v26 }
 0x137   : > { %v1550_v42 = vsel %vm686_vm4, %v449_v57, %v1549_v62  ;;  %v1564_v49 = vsel %vm686_vm4, %v562_v10, %v1563_v33  ;;  %v1755_v15 = vrot.slane %v449_v57, 1  ;;  %v1769_v32 = vrot.slane %v562_v10, 1 }
 0x138   : > { %v451_v48 = vpop.f32.mrf.mxu0  ;;  %v564_v21 = vpop.f32.mrf.mxu1  ;;  %v1960_v40 = vrot.slane %v449_v57, 2  ;;  %v1974_v45 = vrot.slane %v562_v10, 2  ;;  %v2165_v31 = vrot.slane %v449_v57, 3  ;;  %v2179_v28 = vrot.slane %v562_v10, 3 }
 0x139   : > { %v452_v30 = vadd.f32 %v451_v48, %v2730_v25  ;;  %v565_v6 = vadd.f32 %v564_v21, %v2732_v27  ;;  %v1756_v7 = vsel %vm686_vm4, %v1755_v15, %v1754_v56  ;;  %v1770_v26 = vsel %vm686_vm4, %v1769_v32, %v1768_v12 }
 0x13a   : > { %v1961_v62 = vsel %vm686_vm4, %v1960_v40, %v1959_v24  ;;  %v1975_v33 = vsel %vm686_vm4, %v1974_v45, %v1973_v44  ;;  %v2166_v58 = vsel %vm686_vm4, %v2165_v31, %v2164_v60  ;;  %v2180_v18 = vsel %vm686_vm4, %v2179_v28, %v2178_v43 }
 0x13b   : > { %v747_v16 = vrot.slane %v452_v30, 4  ;;  %v761_v3 = vrot.slane %v565_v6, 4  ;;  %v940_v57 = vrot.slane %v452_v30, 3  ;;  %v954_v10 = vrot.slane %v565_v6, 3 }
 0x13c   : > { %v1141_v55 = vrot.slane %v452_v30, 5  ;;  %v1155_v52 = vrot.slane %v565_v6, 5  ;;  %v1346_v48 = vrot.slane %v452_v30, 6  ;;  %v1360_v21 = vrot.slane %v565_v6, 6 }
 0x13d   : > { %v748_v56 = vsel %vm689_vm5, %v747_v16, %v746_v22  ;;  %v762_v12 = vsel %vm689_vm5, %v761_v3, %v760_v1  ;;  %v941_v24 = vsel %vm689_vm5, %v940_v57, %v939_v23  ;;  %v955_v44 = vsel %vm689_vm5, %v954_v10, %v953_v46 }
 0x13e   : > { %v1142_v60 = vsel %vm689_vm5, %v1141_v55, %v1140_v59  ;;  %v1156_v43 = vsel %vm689_vm5, %v1155_v52, %v1154_v29  ;;  %v1347_v15 = vsel %vm689_vm5, %v1346_v48, %v1345_v34  ;;  %v1361_v32 = vsel %vm689_vm5, %v1360_v21, %v1359_v36 }
 0x13f   : > { %v1551_v40 = vrot.slane %v452_v30, 7  ;;  %v1565_v45 = vrot.slane %v565_v6, 7  ;;  %v1757_v31 = vsel %vm689_vm5, %v452_v30, %v1756_v7  ;;  %v1771_v22 = vsel %vm689_vm5, %v565_v6, %v1770_v26 }
 0x140   : > { %v454_v28 = vpop.f32.mrf.mxu0  ;;  %v567_v1 = vpop.f32.mrf.mxu1  ;;  %v1962_v16 = vrot.slane %v452_v30, 1  ;;  %v1976_v23 = vrot.slane %v565_v6, 1  ;;  %v2167_v3 = vrot.slane %v452_v30, 2  ;;  %v2181_v46 = vrot.slane %v565_v6, 2 }
 0x141   : > { %v455_v59 = vadd.f32 %v454_v28, %v2730_v25  ;;  %v568_v29 = vadd.f32 %v567_v1, %v2732_v27  ;;  %v1552_v34 = vsel %vm689_vm5, %v1551_v40, %v1550_v42  ;;  %v1566_v36 = vsel %vm689_vm5, %v1565_v45, %v1564_v49 }
 0x142   : > { %v1963_v57 = vsel %vm689_vm5, %v1962_v16, %v1961_v62  ;;  %v1977_v7 = vsel %vm689_vm5, %v1976_v23, %v1975_v33  ;;  %v2168_v26 = vsel %vm689_vm5, %v2167_v3, %v2166_v58  ;;  %v2182_v10 = vsel %vm689_vm5, %v2181_v46, %v2180_v18 }
 0x143   : > { %v749_v55 = vrot.slane %v455_v59, 3  ;;  %v763_v52 = vrot.slane %v568_v29, 3  ;;  %v942_v30 = vrot.slane %v455_v59, 2  ;;  %v956_v6 = vrot.slane %v568_v29, 2 }
 0x144   : > { %v1143_v48 = vrot.slane %v455_v59, 4  ;;  %v1157_v21 = vrot.slane %v568_v29, 4  ;;  %v1348_v28 = vrot.slane %v455_v59, 5  ;;  %v1362_v1 = vrot.slane %v568_v29, 5 }
 0x145   : > { %v750_v42 = vsel %vm692_vm6, %v749_v55, %v748_v56  ;;  %v764_v49 = vsel %vm692_vm6, %v763_v52, %v762_v12  ;;  %v943_v62 = vsel %vm692_vm6, %v942_v30, %v941_v24  ;;  %v957_v33 = vsel %vm692_vm6, %v956_v6, %v955_v44 }
 0x146   : > { %v1144_v58 = vsel %vm692_vm6, %v1143_v48, %v1142_v60  ;;  %v1158_v18 = vsel %vm692_vm6, %v1157_v21, %v1156_v43  ;;  %v1349_v40 = vsel %vm692_vm6, %v1348_v28, %v1347_v15  ;;  %v1363_v45 = vsel %vm692_vm6, %v1362_v1, %v1361_v32 }
 0x147   : > { %v1553_v16 = vrot.slane %v455_v59, 6  ;;  %v1567_v23 = vrot.slane %v568_v29, 6  ;;  %v1758_v3 = vrot.slane %v455_v59, 7  ;;  %v1772_v46 = vrot.slane %v568_v29, 7 }
 0x148   : > { %v457_v17 = vpop.f32.mrf.mxu0  ;;  %v570_v56 = vpop.f32.mrf.mxu1  ;;  %v1964_v12 = vsel %vm692_vm6, %v455_v59, %v1963_v57  ;;  %v1978_v24 = vsel %vm692_vm6, %v568_v29, %v1977_v7  ;;  %v2169_v55 = vrot.slane %v455_v59, 1  ;;  %v2183_v44 = vrot.slane %v568_v29, 1 }
 0x149   : > { %v458_v60 = vadd.f32 %v457_v17, %v2730_v25  ;;  %v571_v43 = vadd.f32 %v570_v56, %v2732_v27  ;;  %v1554_v15 = vsel %vm692_vm6, %v1553_v16, %v1552_v34  ;;  %v1568_v32 = vsel %vm692_vm6, %v1567_v23, %v1566_v36 }
 0x14a   : > { %v1759_v52 = vsel %vm692_vm6, %v1758_v3, %v1757_v31  ;;  %v1773_v30 = vsel %vm692_vm6, %v1772_v46, %v1771_v22  ;;  %v2170_v6 = vsel %vm692_vm6, %v2169_v55, %v2168_v26  ;;  %v2184_v57 = vsel %vm692_vm6, %v2183_v44, %v2182_v10 }
 0x14b   : > { %v751_v48 = vrot.slane %v458_v60, 2  ;;  %v765_v7 = vrot.slane %v571_v43, 2  ;;  %v944_v59 = vrot.slane %v458_v60, 1  ;;  %v958_v29 = vrot.slane %v571_v43, 1 }
 0x14c   : > { %v1145_v21 = vrot.slane %v458_v60, 3  ;;  %v1159_v17 = vrot.slane %v571_v43, 3  ;;  %v1350_v28 = vrot.slane %v458_v60, 4  ;;  %v1364_v1 = vrot.slane %v571_v43, 4 }
 0x14d   : > { %v752_v34 = vsel %vm695_vm7, %v751_v48, %v750_v42  ;;  %v766_v36 = vsel %vm695_vm7, %v765_v7, %v764_v49  ;;  %v3366_v31 = vsel %vm695_vm7, %v944_v59, %v943_v62  ;;  %v3369_v22 = vsel %vm695_vm7, %v958_v29, %v957_v33 }
 0x14e   : > { %840 = vmatmul.f32.gmra.mxu2 %v752_v34  ;;  %869 = vmatmul.f32.gmra.mxu3 %v766_v36  ;;  %v3372_v26 = vsel %vm695_vm7, %v1145_v21, %v1144_v58  ;;  %v3375_v10 = vsel %vm695_vm7, %v1159_v17, %v1158_v18  ;;  %v3378_v16 = vsel %vm695_vm7, %v1350_v28, %v1349_v40  ;;  %v1555_v42 = vrot.slane %v458_v60, 5  ;;  %v597_v40 = vld [vmem:[%s3894_s3] ss:$8 sm:$0x3] }
 0x14f   : > { %3916 = vst [vmem:[#allocation21_spill] sm:$0xff] %v3378_v16  ;;  %v3381_v49 = vsel %vm695_vm7, %v1364_v1, %v1363_v45  ;;  %v1569_v62 = vrot.slane %v571_v43, 5  ;;  %v1760_v23 = vrot.slane %v458_v60, 6  ;;  %v1774_v3 = vrot.slane %v571_v43, 6 }
 0x150   : > { %3917 = vst [vmem:[#allocation22_spill] sm:$0xff] %v3381_v49  ;;  %v460_v33 = vpop.f32.mrf.mxu0  ;;  %v573_v46 = vpop.f32.mrf.mxu1  ;;  %v3384_v56 = vsel %vm695_vm7, %v1555_v42, %v1554_v15  ;;  %v1965_v58 = vrot.slane %v458_v60, 7  ;;  %v1979_v55 = vrot.slane %v571_v43, 7  ;;  %v3387_v18 = vsel %vm695_vm7, %v458_v60, %v2170_v6  ;;  %v2538_v45 = vld [vmem:[%s3894_s3 + $0x10] ss:$8 sm:$0x3] }
 0x151   : > { %3918 = vst [vmem:[#allocation23_spill] sm:$0xff] %v3384_v56  ;;  %v3396_v44 = vsel %vm695_vm7, %v1569_v62, %v1568_v32  ;;  %v3399_v48 = vsel %vm695_vm7, %v1760_v23, %v1759_v52  ;;  %v2539_v15 = vld [vmem:[%s3894_s3 + $0x20] ss:$8 sm:$0x3]  ;;  %v3405_v60 = vsel %vm695_vm7, %v1774_v3, %v1773_v30  ;;  %v3417_v52 = vadd.f32 %v460_v33, %v2730_v25 }
 0x152   : > { %3919 = vst [vmem:[#allocation24_spill] sm:$0xff] %v3387_v18  ;;  %v3408_v6 = vsel %vm695_vm7, %v1965_v58, %v1964_v12  ;;  %v3411_v7 = vsel %vm695_vm7, %v1979_v55, %v1978_v24  ;;  %v2540_v32 = vld [vmem:[%s3894_s3 + $0x30] ss:$8 sm:$0x3]  ;;  %v3420_v30 = vsel %vm695_vm7, %v571_v43, %v2184_v57  ;;  %v3423_v12 = vadd.f32 %v573_v46, %v2732_v27 }
 0x153   : > { %3920 = vst [vmem:[#allocation25_spill] sm:$0xff] %v3396_v44  ;;  %v1161_v17 = vrot.slane %v3417_v52, 2  ;;  %v1366_v28 = vrot.slane %v3417_v52, 3  ;;  %v1571_v43 = vrot.slane %v3417_v52, 4  ;;  %v1776_v34 = vrot.slane %v3417_v52, 5 }
 0x154   : > { %3921 = vst [vmem:[#allocation26_spill] sm:$0xff] %v3399_v48  ;;  %v1380_v1 = vrot.slane %v3423_v12, 3  ;;  %v1585_v57 = vrot.slane %v3423_v12, 4  ;;  %v1790_v62 = vrot.slane %v3423_v12, 5  ;;  %v1981_v23 = vrot.slane %v3417_v52, 6 }
 0x155   : > { %3922 = vst [vmem:[#allocation27_spill] sm:$0xff] %v3405_v60  ;;  %v1995_v55 = vrot.slane %v3423_v12, 6 }
 0x156   : > { %3923 = vst [vmem:[#allocation28_spill] sm:$0xff] %v3408_v6 }
 0x157   : > { %3924 = vst [vmem:[#allocation29_spill] sm:$0xff] %v3411_v7 }
 0x158   : > { %1000 = vst [vmem:[#allocation1] ss:$9 sm:$0xff] %v597_v40  ;;  %v463_v59 = vpop.f32.mrf.mxu0  ;;  %v576_v24 = vpop.f32.mrf.mxu1  ;;  %v2186_v40 = vrot.slane %v3417_v52, 7 }
 0x159   : > { %1002 = vst [vmem:[#allocation1 + $0x1] ss:$9 sm:$0xff] %v2538_v45  ;;  %v3426_v29 = vadd.f32 %v463_v59, %v2730_v25  ;;  %v3429_v21 = vadd.f32 %v576_v24, %v2732_v27 }
 0x15a   : > { %1004 = vst [vmem:[#allocation1 + $0x2] ss:$9 sm:$0xff] %v2539_v15 }
 0x15b   : > { %1006 = vst [vmem:[#allocation1 + $0x3] ss:$9 sm:$0xff] %v2540_v32  ;;  %v1367_v36 = vrot.slane %v3426_v29, 2  ;;  %v1381_v42 = vrot.slane %v3429_v21, 2  ;;  %v1572_v46 = vrot.slane %v3426_v29, 3  ;;  %v1586_v58 = vrot.slane %v3429_v21, 3 }
 0x15c   : > { %3925 = vst [vmem:[#allocation30_spill] sm:$0xff] %v3420_v30  ;;  %v1162_v45 = vrot.slane %v3426_v29, 1  ;;  %v1176_v15 = vrot.slane %v3429_v21, 1  ;;  %v1777_v59 = vrot.slane %v3426_v29, 4  ;;  %v1791_v7 = vrot.slane %v3429_v21, 4 }
 0x15d   : > { %v1368_v32 = vsel %vm677_vm1, %v1367_v36, %v1366_v28  ;;  %v1382_v24 = vsel %vm677_vm1, %v1381_v42, %v1380_v1  ;;  %v1573_v30 = vsel %vm677_vm1, %v1572_v46, %v1571_v43  ;;  %v1587_v18 = vsel %vm677_vm1, %v1586_v58, %v1585_v57 }
 0x15e   : > { %v1996_v54 = vrot.slane %v3429_v21, 5  ;;  %v2187_v28 = vrot.slane %v3426_v29, 6  ;;  %v1175_v43 = vrot.slane %v3423_v12, 2  ;;  %v1792_v57 = vsel %vm677_vm1, %v1791_v7, %v1790_v62 }
 0x15f   : > { %v1163_v58 = vsel %vm677_vm1, %v1162_v45, %v1161_v17 }
 0x160   : > { %v466_v6 = vpop.f32.mrf.mxu0  ;;  %v579_v14 = vpop.f32.mrf.mxu1  ;;  %v2188_v46 = vsel %vm677_vm1, %v2187_v28, %v2186_v40 }
 0x161   : > { %v3458_v36 = vadd.f32 %v466_v6, %v2730_v25  ;;  %v3461_v1 = vadd.f32 %v579_v14, %v2732_v27  ;;  %v2201_v6 = vrot.slane %v3429_v21, 6 }
 0x162   : > { %v1007_v3 = vld [vmem:[#allocation1] sm:$0xff]  ;;  %v1008_v33 = vld [vmem:[#allocation1 + $0x9] sm:$0xff] }
 0x163   : > { %1026 = vmatpush.xpose.msrb.mxu2 %v1007_v3  ;;  %1055 = vmatpush.xpose.msrb.mxu3 %v1008_v33  ;;  %v1778_v3 = vsel %vm677_vm1, %v1777_v59, %v1776_v34  ;;  %v1982_v33 = vrot.slane %v3426_v29, 5  ;;  %v1997_v34 = vsel %vm677_vm1, %v1996_v54, %v1995_v55  ;;  %v1177_v59 = vsel %vm677_vm1, %v1176_v15, %v1175_v43 }
 0x164   : > { %v1164_v14 = vsel %vm680_vm2, %v3458_v36, %v1163_v58  ;;  %v1178_v53 = vsel %vm680_vm2, %v3461_v1, %v1177_v59  ;;  %v1369_v7 = vrot.slane %v3458_v36, 1  ;;  %v1383_v62 = vrot.slane %v3461_v1, 1  ;;  %1205 = vst [vmem:[#allocation1 + $0x2] ss:$9 sm:$0xff] %v2547_v13 }
 0x165   : > { %v1983_v42 = vsel %vm677_vm1, %v1982_v33, %v1981_v23  ;;  %v2200_v54 = vrot.slane %v3423_v12, 7  ;;  %v1574_v55 = vrot.slane %v3458_v36, 2  ;;  %v1588_v40 = vrot.slane %v3461_v1, 2  ;;  %1207 = vst [vmem:[#allocation1 + $0x3] ss:$9 sm:$0xff] %v2548_v8 }
 0x166   : > { %v1370_v23 = vsel %vm680_vm2, %v1369_v7, %v1368_v32  ;;  %v1384_v17 = vsel %vm680_vm2, %v1383_v62, %v1382_v24  ;;  %v1779_v45 = vrot.slane %v3458_v36, 3  ;;  %v1793_v15 = vrot.slane %v3461_v1, 3 }
 0x167   : > { %v1984_v33 = vrot.slane %v3458_v36, 4  ;;  %v1998_v28 = vrot.slane %v3461_v1, 4  ;;  %v1575_v59 = vsel %vm680_vm2, %v1574_v55, %v1573_v30  ;;  %v1589_v32 = vsel %vm680_vm2, %v1588_v40, %v1587_v18 }
 0x168   : > { %v469_v43 = vpop.f32.mrf.mxu0  ;;  %v582_v58 = vpop.f32.mrf.mxu1  ;;  %v2189_v24 = vrot.slane %v3458_v36, 5  ;;  %v2202_v7 = vsel %vm677_vm1, %v2201_v6, %v2200_v54  ;;  %v1780_v48 = vsel %vm680_vm2, %v1779_v45, %v1778_v3  ;;  %v1794_v11 = vsel %vm680_vm2, %v1793_v15, %v1792_v57 }
 0x169   : > { %v3491_v62 = vadd.f32 %v469_v43, %v2730_v25  ;;  %v3494_v60 = vadd.f32 %v582_v58, %v2732_v27  ;;  %v1985_v9 = vsel %vm680_vm2, %v1984_v33, %v1983_v42  ;;  %v1999_v30 = vsel %vm680_vm2, %v1998_v28, %v1997_v34 }
 0x16a   : > { %v2190_v18 = vsel %vm680_vm2, %v2189_v24, %v2188_v46  ;;  %v2203_v55 = vrot.slane %v3461_v1, 5  ;;  %v767_v57 = vrot.slane %v3417_v52, 1 }
 0x16b   : > { %v1165_v6 = vrot.slane %v3491_v62, 7  ;;  %v1179_v54 = vrot.slane %v3494_v60, 7  ;;  %v1371_v40 = vsel %vm683_vm3, %v3491_v62, %v1370_v23  ;;  %v1385_v3 = vsel %vm683_vm3, %v3494_v60, %v1384_v17 }
 0x16c   : > { %v1576_v46 = vrot.slane %v3491_v62, 1  ;;  %v1590_v45 = vrot.slane %v3494_v60, 1  ;;  %v1781_v15 = vrot.slane %v3491_v62, 2  ;;  %v1795_v33 = vrot.slane %v3494_v60, 2 }
 0x16d   : > { %v1166_v42 = vsel %vm683_vm3, %v1165_v6, %v1164_v14  ;;  %v1180_v34 = vsel %vm683_vm3, %v1179_v54, %v1178_v53  ;;  %v1986_v28 = vrot.slane %v3491_v62, 3  ;;  %v2000_v23 = vrot.slane %v3494_v60, 3 }
 0x16e   : > { %v1577_v58 = vsel %vm683_vm3, %v1576_v46, %v1575_v59  ;;  %v1591_v14 = vsel %vm683_vm3, %v1590_v45, %v1589_v32  ;;  %v2191_v53 = vrot.slane %v3491_v62, 4  ;;  %v2204_v24 = vsel %vm680_vm2, %v2203_v55, %v2202_v7 }
 0x16f   : > { %v1782_v51 = vsel %vm683_vm3, %v1781_v15, %v1780_v48  ;;  %v1796_v50 = vsel %vm683_vm3, %v1795_v33, %v1794_v11  ;;  %v1987_v44 = vsel %vm683_vm3, %v1986_v28, %v1985_v9  ;;  %v2001_v59 = vsel %vm683_vm3, %v2000_v23, %v1999_v30  ;;  %v2545_v33 = vld [vmem:[%s3894_s3 + $0x2] ss:$8 sm:$0x3]  ;;  %v2546_v28 = vld [vmem:[%s3894_s3 + $0x12] ss:$8 sm:$0x3] }
 0x170   : > { %v472_v43 = vpop.f32.mrf.mxu0  ;;  %v585_v17 = vpop.f32.mrf.mxu1  ;;  %v3532_v32 = vsel %vm683_vm3, %v2191_v53, %v2190_v18  ;;  %v768_v7 = vsel %vm677_vm1, %v3426_v29, %v767_v57  ;;  %v781_v55 = vrot.slane %v3423_v12, 1  ;;  %v2205_v46 = vrot.slane %v3494_v60, 4  ;;  %1201 = vst [vmem:[#allocation1] ss:$9 sm:$0xff] %v2545_v33 }
 0x171   : > { %v3522_v6 = vadd.f32 %v472_v43, %v2730_v25  ;;  %v3525_v54 = vadd.f32 %v585_v17, %v2732_v27  ;;  %v769_v30 = vrot.slane %v3458_v36, 7  ;;  %v771_v18 = vrot.slane %v3491_v62, 6  ;;  %1203 = vst [vmem:[#allocation1 + $0x1] ss:$9 sm:$0xff] %v2546_v28 }
 0x172   : > { %v783_v15 = vrot.slane %v3461_v1, 7  ;;  %v785_v57 = vrot.slane %v3494_v60, 6  ;;  %v782_v56 = vsel %vm677_vm1, %v3429_v21, %v781_v55 }
 0x173   : > { %v1167_v45 = vrot.slane %v3522_v6, 6  ;;  %v1181_v48 = vrot.slane %v3525_v54, 6  ;;  %v1372_v11 = vrot.slane %v3522_v6, 7  ;;  %v1386_v9 = vrot.slane %v3525_v54, 7 }
 0x174   : > { %v1783_v55 = vrot.slane %v3522_v6, 1  ;;  %v773_v16 = vrot.slane %v3522_v6, 5 }
 0x175   : > { %v1168_v23 = vsel %vm686_vm4, %v1167_v45, %v1166_v42  ;;  %v1182_v43 = vsel %vm686_vm4, %v1181_v48, %v1180_v34  ;;  %v1373_v17 = vsel %vm686_vm4, %v1372_v11, %v1371_v40  ;;  %v1387_v53 = vsel %vm686_vm4, %v1386_v9, %v1385_v3 }
 0x176   : > { %v1578_v42 = vsel %vm686_vm4, %v3522_v6, %v1577_v58  ;;  %v1592_v34 = vsel %vm686_vm4, %v3525_v54, %v1591_v14  ;;  %v2206_v40 = vsel %vm683_vm3, %v2205_v46, %v2204_v24  ;;  %v1797_v48 = vrot.slane %v3525_v54, 1 }
 0x177   : > { %v1988_v11 = vrot.slane %v3522_v6, 2  ;;  %v2002_v9 = vrot.slane %v3525_v54, 2  ;;  %v770_v14 = vsel %vm680_vm2, %v769_v30, %v768_v7  ;;  %v784_v24 = vsel %vm680_vm2, %v783_v15, %v782_v56 }
 0x178   : > { %v475_v3 = vpop.f32.mrf.mxu0  ;;  %v588_v45 = vpop.f32.mrf.mxu1  ;;  %v1784_v46 = vsel %vm686_vm4, %v1783_v55, %v1782_v51  ;;  %v1798_v33 = vsel %vm686_vm4, %v1797_v48, %v1796_v50  ;;  %v2193_v7 = vrot.slane %v3522_v6, 3 }
 0x179   : > { %v3574_v41 = vadd.f32 %v475_v3, %v2730_v25  ;;  %v3577_v58 = vadd.f32 %v588_v45, %v2732_v27  ;;  %v1989_v47 = vsel %vm686_vm4, %v1988_v11, %v1987_v44  ;;  %v2003_v49 = vsel %vm686_vm4, %v2002_v9, %v2001_v59 }
 0x17a   : > { %v772_v3 = vsel %vm683_vm3, %v771_v18, %v770_v14  ;;  %v786_v45 = vsel %vm683_vm3, %v785_v57, %v784_v24  ;;  %v787_v59 = vrot.slane %v3525_v54, 5  ;;  %v2207_v18 = vrot.slane %v3525_v54, 3 }
 0x17b   : > { %v1169_v56 = vrot.slane %v3574_v41, 5  ;;  %v1183_v13 = vrot.slane %v3577_v58, 5  ;;  %v1374_v51 = vrot.slane %v3574_v41, 6  ;;  %v1388_v50 = vrot.slane %v3577_v58, 6 }
 0x17c   : > { %v775_v44 = vrot.slane %v3574_v41, 4  ;;  %v789_v30 = vrot.slane %v3577_v58, 4  ;;  %v1579_v55 = vrot.slane %v3574_v41, 7  ;;  %v1593_v48 = vrot.slane %v3577_v58, 7 }
 0x17d   : > { %v1170_v8 = vsel %vm689_vm5, %v1169_v56, %v1168_v23  ;;  %v1184_v15 = vsel %vm689_vm5, %v1183_v13, %v1182_v43  ;;  %v1375_v57 = vsel %vm689_vm5, %v1374_v51, %v1373_v17  ;;  %v1389_v28 = vsel %vm689_vm5, %v1388_v50, %v1387_v53  ;;  %v1208_v51 = vld [vmem:[#allocation1] sm:$0xff]  ;;  %v1209_v50 = vld [vmem:[#allocation1 + $0x9] sm:$0xff] }
 0x17e   : > { %v1785_v11 = vsel %vm689_vm5, %v3574_v41, %v1784_v46  ;;  %v1799_v9 = vsel %vm689_vm5, %v3577_v58, %v1798_v33  ;;  %v1990_v23 = vrot.slane %v3574_v41, 1  ;;  %v2004_v43 = vrot.slane %v3577_v58, 1  ;;  %1227 = vmatpush.xpose.msra.mxu2 %v1208_v51  ;;  %1256 = vmatpush.xpose.msra.mxu3 %v1209_v50 }
 0x17f   : > { %v2194_v17 = vsel %vm686_vm4, %v2193_v7, %v3532_v32  ;;  %v2195_v53 = vrot.slane %v3574_v41, 2  ;;  %v1580_v46 = vsel %vm689_vm5, %v1579_v55, %v1578_v42  ;;  %v1594_v33 = vsel %vm689_vm5, %v1593_v48, %v1592_v34 }
 0x180   : > { %v478_v14 = vpop.f32.mrf.mxu0  ;;  %v591_v24 = vpop.f32.mrf.mxu1  ;;  %v1991_v0 = vsel %vm689_vm5, %v1990_v23, %v1989_v47  ;;  %v2005_v2 = vsel %vm689_vm5, %v2004_v43, %v2003_v49  ;;  %v2208_v7 = vsel %vm686_vm4, %v2207_v18, %v2206_v40  ;;  %v788_v20 = vsel %vm686_vm4, %v787_v59, %v786_v45 }
 0x181   : > { %v3613_v56 = vadd.f32 %v478_v14, %v2730_v25  ;;  %v3616_v13 = vadd.f32 %v591_v24, %v2732_v27  ;;  %v2196_v32 = vsel %vm689_vm5, %v2195_v53, %v2194_v17  ;;  %v774_v14 = vsel %vm686_vm4, %v773_v16, %v772_v3 }
 0x182   : > { %v776_v49 = vsel %vm689_vm5, %v775_v44, %v774_v14  ;;  %v790_v40 = vsel %vm689_vm5, %v789_v30, %v788_v20 }
 0x183   : > { %v1171_v42 = vrot.slane %v3613_v56, 4  ;;  %v1185_v34 = vrot.slane %v3616_v13, 4  ;;  %v1376_v55 = vrot.slane %v3613_v56, 5  ;;  %v1390_v47 = vrot.slane %v3616_v13, 5 }
 0x184   : > { %v777_v48 = vrot.slane %v3613_v56, 3  ;;  %v791_v16 = vrot.slane %v3616_v13, 3  ;;  %v1581_v24 = vrot.slane %v3613_v56, 6  ;;  %v1595_v23 = vrot.slane %v3616_v13, 6 }
 0x185   : > { %v1172_v3 = vsel %vm692_vm6, %v1171_v42, %v1170_v8  ;;  %v1186_v45 = vsel %vm692_vm6, %v1185_v34, %v1184_v15  ;;  %v1377_v59 = vsel %vm692_vm6, %v1376_v55, %v1375_v57  ;;  %v1391_v18 = vsel %vm692_vm6, %v1390_v47, %v1389_v28 }
 0x186   : > { %v1786_v44 = vrot.slane %v3613_v56, 7  ;;  %v1800_v43 = vrot.slane %v3616_v13, 7  ;;  %v1992_v30 = vsel %vm692_vm6, %v3613_v56, %v1991_v0  ;;  %v2006_v8 = vsel %vm692_vm6, %v3616_v13, %v2005_v2 }
 0x187   : > { %v2197_v15 = vrot.slane %v3613_v56, 1  ;;  %v2209_v57 = vrot.slane %v3577_v58, 2  ;;  %v1582_v51 = vsel %vm692_vm6, %v1581_v24, %v1580_v46  ;;  %v1596_v50 = vsel %vm692_vm6, %v1595_v23, %v1594_v33 }
 0x188   : > { %v481_v17 = vpop.f32.mrf.mxu0  ;;  %v594_v20 = vpop.f32.mrf.mxu1  ;;  %v1787_v14 = vsel %vm692_vm6, %v1786_v44, %v1785_v11  ;;  %v1801_v0 = vsel %vm692_vm6, %v1800_v43, %v1799_v9  ;;  %v778_v34 = vsel %vm692_vm6, %v777_v48, %v776_v49  ;;  %v792_v55 = vsel %vm692_vm6, %v791_v16, %v790_v40 }
 0x189   : > { %v3649_v28 = vadd.f32 %v481_v17, %v2730_v25  ;;  %v3652_v53 = vadd.f32 %v594_v20, %v2732_v27  ;;  %v2198_v2 = vsel %vm692_vm6, %v2197_v15, %v2196_v32  ;;  %v2210_v42 = vsel %vm689_vm5, %v2209_v57, %v2208_v7 }
 0x18a   : > { %v2211_v15 = vrot.slane %v3616_v13, 1 }
 0x18b   : > { %v779_v25 = vrot.slane %v3649_v28, 2  ;;  %v793_v27 = vrot.slane %v3652_v53, 2  ;;  %v1173_v46 = vrot.slane %v3649_v28, 3  ;;  %v1187_v33 = vrot.slane %v3652_v53, 3 }
 0x18c   : > { %v1378_v11 = vrot.slane %v3649_v28, 4  ;;  %v1392_v9 = vrot.slane %v3652_v53, 4  ;;  %v1583_v40 = vrot.slane %v3649_v28, 5  ;;  %v1597_v24 = vrot.slane %v3652_v53, 5 }
 0x18d   : > { %v780_v32 = vsel %vm695_vm7, %v779_v25, %v778_v34  ;;  %v794_v7 = vsel %vm695_vm7, %v793_v27, %v792_v55  ;;  %v3671_v47 = vsel %vm695_vm7, %v1173_v46, %v1172_v3  ;;  %v3674_v49 = vsel %vm695_vm7, %v1187_v33, %v1186_v45 }
 0x18e   : > { %843 = vmatmul.f32.gmra.mxu2 %v780_v32  ;;  %872 = vmatmul.f32.gmra.mxu3 %v794_v7  ;;  %v3677_v48 = vsel %vm695_vm7, %v1378_v11, %v1377_v59  ;;  %v3681_v16 = vsel %vm695_vm7, %v1392_v9, %v1391_v18  ;;  %v1788_v23 = vrot.slane %v3649_v28, 6  ;;  %v1802_v44 = vrot.slane %v3652_v53, 6  ;;  %v2554_v32 = vld [vmem:[%s3894_s3 + $0x14] ss:$8 sm:$0x3] }
 0x18f   : > { %v3687_v3 = vsel %vm695_vm7, %v1583_v40, %v1582_v51  ;;  %v1993_v45 = vrot.slane %v3649_v28, 7  ;;  %v2007_v43 = vrot.slane %v3652_v53, 7  ;;  %v3693_v59 = vsel %vm695_vm7, %v3649_v28, %v2198_v2  ;;  %v2555_v7 = vld [vmem:[%s3894_s3 + $0x24] ss:$8 sm:$0x3] }
 0x190   : > { %v3696_v18 = vsel %vm695_vm7, %v1597_v24, %v1596_v50  ;;  %v3699_v17 = vsel %vm695_vm7, %v1788_v23, %v1787_v14  ;;  %v3702_v20 = vsel %vm695_vm7, %v1802_v44, %v1801_v0  ;;  %v2212_v2 = vsel %vm692_vm6, %v2211_v15, %v2210_v42  ;;  %v2549_v14 = vld [vmem:[%s3894_s3 + $0x3] ss:$8 sm:$0x3]  ;;  %v2552_v0 = vld [vmem:[%s3894_s3 + $0x33] ss:$8 sm:$0x3] }
 0x191   : > { %v3706_v57 = vsel %vm695_vm7, %v1993_v45, %v1992_v30  ;;  %v3709_v51 = vsel %vm695_vm7, %v2007_v43, %v2006_v8  ;;  %v3714_v50 = vsel %vm695_vm7, %v3652_v53, %v2212_v2  ;;  %v2550_v30 = vld [vmem:[%s3894_s3 + $0x13] ss:$8 sm:$0x3]  ;;  %v2551_v8 = vld [vmem:[%s3894_s3 + $0x23] ss:$8 sm:$0x3] }
 0x192   : > { %1406 = vst [vmem:[#allocation1] ss:$9 sm:$0xff] %v2549_v14  ;;  %v960_v42 = vrot.slane %v3426_v29, 7  ;;  %v974_v34 = vrot.slane %v3429_v21, 7  ;;  %v962_v25 = vrot.slane %v3458_v36, 6  ;;  %v976_v55 = vrot.slane %v3461_v1, 6 }
 0x193   : > { %1408 = vst [vmem:[#allocation1 + $0x1] ss:$9 sm:$0xff] %v2550_v30  ;;  %v964_v27 = vrot.slane %v3491_v62, 5  ;;  %v978_v46 = vrot.slane %v3494_v60, 5  ;;  %v968_v21 = vrot.slane %v3574_v41, 3  ;;  %v982_v1 = vrot.slane %v3577_v58, 3 }
 0x194   : > { %1410 = vst [vmem:[#allocation1 + $0x2] ss:$9 sm:$0xff] %v2551_v8  ;;  %v961_v29 = vsel %vm677_vm1, %v960_v42, %v3417_v52  ;;  %v975_v36 = vsel %vm677_vm1, %v974_v34, %v3423_v12  ;;  %v984_v62 = vrot.slane %v3616_v13, 2  ;;  %v986_v41 = vrot.slane %v3652_v53, 1  ;;  %v3926_v24 = vld [vmem:[#allocation2_spill] sm:$0xff]  ;;  %v3929_v44 = vld [vmem:[#allocation21_spill] sm:$0xff]  ;;  %v864_v8 = vpop.f32.mrf.mxu3 }
 0x195   : > { %1412 = vst [vmem:[#allocation1 + $0x3] ss:$9 sm:$0xff] %v2552_v0  ;;  %v963_v60 = vsel %vm680_vm2, %v962_v25, %v961_v29  ;;  %v2553_v53 = vld [vmem:[%s3894_s3 + $0x4] ss:$8 sm:$0x3]  ;;  %v3931_v43 = vld [vmem:[#allocation3_spill] sm:$0xff] }
 0x196   : > { %1027 = vmatmul.f32.vlgmr.msrb.gmra.mxu2 %v3002_v35  ;;  %1056 = vmatmul.f32.vlgmr.msrb.gmra.mxu3 %v3005_v37  ;;  %v2556_v40 = vld [vmem:[%s3894_s3 + $0x34] ss:$8 sm:$0x3]  ;;  %v3930_v45 = vld [vmem:[#allocation22_spill] sm:$0xff]  ;;  %v3932_v15 = vld [vmem:[#allocation5_spill] sm:$0xff] }
 0x197   : > { %v2561_v2 = vld [vmem:[%s3894_s3 + $0x6] ss:$8 sm:$0x3]  ;;  %v2562_v14 = vld [vmem:[%s3894_s3 + $0x16] ss:$8 sm:$0x3] }
 0x198   : > { %v2563_v30 = vld [vmem:[%s3894_s3 + $0x26] ss:$8 sm:$0x3] }
 0x199   : > { %v3933_v0 = vld [vmem:[#allocation13_spill] sm:$0xff] }
 0x19c   : > { %v1413_v35 = vld [vmem:[#allocation1] sm:$0xff]  ;;  %v1414_v37 = vld [vmem:[#allocation1 + $0x9] sm:$0xff]  ;;  %v867_v42 = vpop.f32.mrf.mxu3 }
 0x19d   : > { %1432 = vmatpush.xpose.msrb.mxu2 %v1413_v35  ;;  %1461 = vmatpush.xpose.msrb.mxu3 %v1414_v37  ;;  %1611 = vst [vmem:[#allocation1] ss:$9 sm:$0xff] %v2553_v53  ;;  %v3934_v35 = vld [vmem:[#allocation15_spill] sm:$0xff]  ;;  %v3941_v53 = vld [vmem:[#allocation26_spill] sm:$0xff] }
 0x19e   : > { %1030 = vmatmul.f32.gmra.mxu2 %v3210_v61  ;;  %1059 = vmatmul.f32.gmra.mxu3 %v3213_v4  ;;  %v966_v61 = vrot.slane %v3522_v6, 4  ;;  %v980_v4 = vrot.slane %v3525_v54, 4  ;;  %v965_v6 = vsel %vm683_vm3, %v964_v27, %v963_v60  ;;  %v972_v54 = vrot.slane %v3649_v28, 1  ;;  %1613 = vst [vmem:[#allocation1 + $0x1] ss:$9 sm:$0xff] %v2554_v32  ;;  %v3936_v27 = vld [vmem:[#allocation25_spill] sm:$0xff] }
 0x19f   : > { %1615 = vst [vmem:[#allocation1 + $0x2] ss:$9 sm:$0xff] %v2555_v7  ;;  %v2565_v60 = vld [vmem:[%s3894_s3 + $0x7] ss:$8 sm:$0x3]  ;;  %v3942_v32 = vld [vmem:[#allocation27_spill] sm:$0xff] }
 0x1a0   : > { %v967_v12 = vsel %vm686_vm4, %v966_v61, %v965_v6  ;;  %1617 = vst [vmem:[#allocation1 + $0x3] ss:$9 sm:$0xff] %v2556_v40 }
 0x1a1   : > { %v969_v33 = vsel %vm689_vm5, %v968_v21, %v967_v12  ;;  %v3940_v12 = vld [vmem:[#allocation17_spill] sm:$0xff] }
 0x1a6   : > { %1033 = vmatmul.f32.gmra.mxu2 %v3366_v31  ;;  %1062 = vmatmul.f32.gmra.mxu3 %v3369_v22  ;;  %v970_v31 = vrot.slane %v3613_v56, 2  ;;  %v977_v22 = vsel %vm680_vm2, %v976_v55, %v975_v36  ;;  %v3935_v55 = vld [vmem:[#allocation23_spill] sm:$0xff]  ;;  %v3937_v36 = vld [vmem:[#allocation6_spill] sm:$0xff] }
 0x1a7   : > { %v979_v52 = vsel %vm683_vm3, %v978_v46, %v977_v22  ;;  %v2568_v22 = vld [vmem:[%s3894_s3 + $0x37] ss:$8 sm:$0x3] }
 0x1a8   : > { %v981_v58 = vsel %vm686_vm4, %v980_v4, %v979_v52  ;;  %v971_v11 = vsel %vm692_vm6, %v970_v31, %v969_v33  ;;  %v2566_v31 = vld [vmem:[%s3894_s3 + $0x17] ss:$8 sm:$0x3] }
 0x1a9   : > { %v983_v56 = vsel %vm689_vm5, %v982_v1, %v981_v58  ;;  %v973_v9 = vsel %vm695_vm7, %v972_v54, %v971_v11  ;;  %v3938_v1 = vld [vmem:[#allocation7_spill] sm:$0xff] }
 0x1aa   : > { %v985_v13 = vsel %vm692_vm6, %v984_v62, %v983_v56 }
 0x1ab   : > { %v987_v28 = vsel %vm695_vm7, %v986_v41, %v985_v13  ;;  %v3939_v41 = vld [vmem:[#allocation16_spill] sm:$0xff] }
 0x1ae   : > { %1036 = vmatmul.f32.gmra.mxu2 %v973_v9  ;;  %1065 = vmatmul.f32.gmra.mxu3 %v987_v28 }
 0x1b6   : > { %1228 = vmatmul.f32.vlgmr.msra.gmra.mxu2 %v3008_v38  ;;  %1257 = vmatmul.f32.vlgmr.msra.gmra.mxu3 %v3011_v39  ;;  %v1618_v38 = vld [vmem:[#allocation1] sm:$0xff]  ;;  %v1619_v39 = vld [vmem:[#allocation1 + $0x9] sm:$0xff] }
 0x1b7   : > { %1637 = vmatpush.xpose.msra.mxu2 %v1618_v38  ;;  %1666 = vmatpush.xpose.msra.mxu3 %v1619_v39 }
 0x1be   : > { %1231 = vmatmul.f32.gmra.mxu2 %v3216_v63  ;;  %1260 = vmatmul.f32.gmra.mxu3 %v3219_v5  ;;  %v2557_v63 = vld [vmem:[%s3894_s3 + $0x5] ss:$8 sm:$0x3]  ;;  %v2558_v5 = vld [vmem:[%s3894_s3 + $0x15] ss:$8 sm:$0x3] }
 0x1bf   : > { %1816 = vst [vmem:[#allocation1] ss:$9 sm:$0xff] %v2557_v63 }
 0x1c0   : > { %1818 = vst [vmem:[#allocation1 + $0x1] ss:$9 sm:$0xff] %v2558_v5 }
 0x1c6   : > { %1234 = vmatmul.f32.gmra.mxu2 %v3372_v26  ;;  %1263 = vmatmul.f32.gmra.mxu3 %v3375_v10  ;;  %v2559_v26 = vld [vmem:[%s3894_s3 + $0x25] ss:$8 sm:$0x3]  ;;  %v2560_v10 = vld [vmem:[%s3894_s3 + $0x35] ss:$8 sm:$0x3] }
 0x1c7   : > { %1820 = vst [vmem:[#allocation1 + $0x2] ss:$9 sm:$0xff] %v2559_v26 }
 0x1c8   : > { %1822 = vst [vmem:[#allocation1 + $0x3] ss:$9 sm:$0xff] %v2560_v10 }
 0x1ce   : > { %1237 = vmatmul.f32.gmra.mxu2 %v3671_v47  ;;  %1266 = vmatmul.f32.gmra.mxu3 %v3674_v49  ;;  %v3928_v47 = vld [vmem:[#allocation12_spill] sm:$0xff] }
 0x1cf   : > { %v1823_v49 = vld [vmem:[#allocation1] sm:$0xff]  ;;  %v1824_v23 = vld [vmem:[#allocation1 + $0x9] sm:$0xff] }
 0x1d0   : > { %2021 = vst [vmem:[#allocation1] ss:$9 sm:$0xff] %v2561_v2 }
 0x1d1   : > { %2023 = vst [vmem:[#allocation1 + $0x1] ss:$9 sm:$0xff] %v2562_v14  ;;  %v870_v61 = vpop.f32.mrf.mxu3 }
 0x1d2   : > { %2025 = vst [vmem:[#allocation1 + $0x2] ss:$9 sm:$0xff] %v2563_v30  ;;  %v3947_v30 = vld [vmem:[#allocation28_spill] sm:$0xff] }
 0x1d6   : > { %1433 = vmatmul.f32.vlgmr.msrb.gmra.mxu2 %v3014_v19  ;;  %1462 = vmatmul.f32.vlgmr.msrb.gmra.mxu3 %v3926_v24  ;;  %v3927_v19 = vld [vmem:[#allocation11_spill] sm:$0xff] }
 0x1d7   : > { %1842 = vmatpush.xpose.msrb.mxu2 %v1823_v49  ;;  %1871 = vmatpush.xpose.msrb.mxu3 %v1824_v23 }
 0x1de   : > { %1436 = vmatmul.f32.gmra.mxu2 %v3927_v19  ;;  %1465 = vmatmul.f32.gmra.mxu3 %v3928_v47  ;;  %v3943_v19 = vld [vmem:[#allocation8_spill] sm:$0xff]  ;;  %v3944_v47 = vld [vmem:[#allocation9_spill] sm:$0xff] }
 0x1e6   : > { %1439 = vmatmul.f32.gmra.mxu2 %v3929_v44  ;;  %1468 = vmatmul.f32.gmra.mxu3 %v3930_v45 }
 0x1ee   : > { %1442 = vmatmul.f32.gmra.mxu2 %v3677_v48  ;;  %1471 = vmatmul.f32.gmra.mxu3 %v3681_v16  ;;  %v2564_v48 = vld [vmem:[%s3894_s3 + $0x36] ss:$8 sm:$0x3]  ;;  %v835_v16 = vpop.f32.mrf.mxu2 }
 0x1ef   : > { %2027 = vst [vmem:[#allocation1 + $0x3] ss:$9 sm:$0xff] %v2564_v48  ;;  %v3948_v48 = vld [vmem:[#allocation29_spill] sm:$0xff] }
 0x1f6   : > { %1638 = vmatmul.f32.vlgmr.msra.gmra.mxu2 %v3931_v43  ;;  %1667 = vmatmul.f32.vlgmr.msra.gmra.mxu3 %v3932_v15  ;;  %v838_v37 = vpop.f32.mrf.mxu2  ;;  %v2028_v34 = vld [vmem:[#allocation1] sm:$0xff]  ;;  %v2029_v25 = vld [vmem:[#allocation1 + $0x9] sm:$0xff] }
 0x1f7   : > { %2047 = vmatpush.xpose.msra.mxu2 %v2028_v34  ;;  %2076 = vmatpush.xpose.msra.mxu3 %v2029_v25  ;;  %2226 = vst [vmem:[#allocation1] ss:$9 sm:$0xff] %v2565_v60  ;;  %v868_v58 = vadd.f32 %v867_v42, %v838_v37  ;;  %v3945_v43 = vld [vmem:[#allocation18_spill] sm:$0xff]  ;;  %v3946_v15 = vld [vmem:[#allocation19_spill] sm:$0xff] }
 0x1f8   : > { %2228 = vst [vmem:[#allocation1 + $0x1] ss:$9 sm:$0xff] %v2566_v31  ;;  %v3953_v31 = vld [vmem:[#allocation24_spill] sm:$0xff] }
 0x1f9   : > { %2232 = vst [vmem:[#allocation1 + $0x3] ss:$9 sm:$0xff] %v2568_v22 }
 0x1fe   : > { %1641 = vmatmul.f32.gmra.mxu2 %v3933_v0  ;;  %1670 = vmatmul.f32.gmra.mxu3 %v3934_v35  ;;  %v841_v46 = vpop.f32.mrf.mxu2 }
 0x1ff   : > { %v871_v7 = vadd.f32 %v870_v61, %v841_v46 }
 0x206   : > { %1644 = vmatmul.f32.gmra.mxu2 %v3935_v55  ;;  %1673 = vmatmul.f32.gmra.mxu3 %v3936_v27  ;;  %v3949_v55 = vld [vmem:[#allocation4_spill] sm:$0xff]  ;;  %v3950_v27 = vld [vmem:[#allocation10_spill] sm:$0xff] }
 0x20e   : > { %1647 = vmatmul.f32.gmra.mxu2 %v3687_v3  ;;  %1676 = vmatmul.f32.gmra.mxu3 %v3696_v18  ;;  %v2567_v3 = vld [vmem:[%s3894_s3 + $0x27] ss:$8 sm:$0x3]  ;;  %v865_v18 = vadd.f32 %v864_v8, %v835_v16 }
 0x20f   : > { %2230 = vst [vmem:[#allocation1 + $0x2] ss:$9 sm:$0xff] %v2567_v3  ;;  %v3954_v3 = vld [vmem:[#allocation30_spill] sm:$0xff] }
 0x211   : > { %v844_v4 = vpop.f32.mrf.mxu2  ;;  %v873_v29 = vpop.f32.mrf.mxu3 }
 0x212   : > { %v874_v21 = vadd.f32 %v873_v29, %v844_v4 }
 0x216   : > { %1843 = vmatmul.f32.vlgmr.msrb.gmra.mxu2 %v3937_v36  ;;  %1872 = vmatmul.f32.vlgmr.msrb.gmra.mxu3 %v3938_v1  ;;  %v2233_v13 = vld [vmem:[#allocation1] sm:$0xff]  ;;  %v2234_v9 = vld [vmem:[#allocation1 + $0x9] sm:$0xff]  ;;  %v3952_v36 = vld [vmem:[#allocation20_spill] sm:$0xff] }
 0x217   : > { %2252 = vmatpush.xpose.msrb.mxu2 %v2233_v13  ;;  %2281 = vmatpush.xpose.msrb.mxu3 %v2234_v9 }
 0x219   : > { %v1028_v62 = vpop.f32.mrf.mxu2  ;;  %v1057_v6 = vpop.f32.mrf.mxu3 }
 0x21a   : > { %v1029_v54 = vadd.f32 %v1028_v62, %v865_v18 }
 0x21c   : > { %v1058_v52 = vadd.f32 %v1057_v6, %v1029_v54 }
 0x21e   : > { %1846 = vmatmul.f32.gmra.mxu2 %v3939_v41  ;;  %1875 = vmatmul.f32.gmra.mxu3 %v3940_v12 }
 0x221   : > { %v1031_v33 = vpop.f32.mrf.mxu2  ;;  %v1060_v56 = vpop.f32.mrf.mxu3 }
 0x222   : > { %v1032_v11 = vadd.f32 %v1031_v33, %v868_v58 }
 0x224   : > { %v1061_v28 = vadd.f32 %v1060_v56, %v1032_v11 }
 0x226   : > { %1849 = vmatmul.f32.gmra.mxu2 %v3941_v53  ;;  %1878 = vmatmul.f32.gmra.mxu3 %v3942_v32 }
 0x229   : > { %v1034_v40 = vpop.f32.mrf.mxu2  ;;  %v1063_v38 = vpop.f32.mrf.mxu3 }
 0x22a   : > { %v1035_v39 = vadd.f32 %v1034_v40, %v871_v7 }
 0x22c   : > { %v1064_v24 = vadd.f32 %v1063_v38, %v1035_v39 }
 0x22e   : > { %1852 = vmatmul.f32.gmra.mxu2 %v3699_v17  ;;  %1881 = vmatmul.f32.gmra.mxu3 %v3702_v20 }
 0x231   : > { %v1037_v63 = vpop.f32.mrf.mxu2  ;;  %v1066_v5 = vpop.f32.mrf.mxu3 }
 0x232   : > { %v1038_v26 = vadd.f32 %v1037_v63, %v874_v21  ;;  %v3951_v21 = vld [vmem:[#allocation14_spill] sm:$0xff] }
 0x234   : > { %v1067_v10 = vadd.f32 %v1066_v5, %v1038_v26 }
 0x236   : > { %2048 = vmatmul.f32.vlgmr.msra.gmra.mxu2 %v3943_v19  ;;  %2077 = vmatmul.f32.vlgmr.msra.gmra.mxu3 %v3944_v47 }
 0x239   : > { %v1229_v49 = vpop.f32.mrf.mxu2  ;;  %v1258_v23 = vpop.f32.mrf.mxu3 }
 0x23a   : > { %v1259_v44 = vadd.f32 %v1258_v23, %v1229_v49 }
 0x23c   : > { %v1270_v45 = vadd.f32 %v1259_v44, %v1058_v52 }
 0x23e   : > { %2051 = vmatmul.f32.gmra.mxu2 %v3945_v43  ;;  %2080 = vmatmul.f32.gmra.mxu3 %v3946_v15 }
 0x241   : > { %v1232_v2 = vpop.f32.mrf.mxu2  ;;  %v1261_v17 = vpop.f32.mrf.mxu3 }
 0x242   : > { %v1262_v14 = vadd.f32 %v1261_v17, %v1232_v2 }
 0x244   : > { %v1271_v20 = vadd.f32 %v1262_v14, %v1061_v28 }
 0x246   : > { %2054 = vmatmul.f32.gmra.mxu2 %v3947_v30  ;;  %2083 = vmatmul.f32.gmra.mxu3 %v3948_v48 }
 0x249   : > { %v1235_v16 = vpop.f32.mrf.mxu2  ;;  %v1264_v8 = vpop.f32.mrf.mxu3 }
 0x24a   : > { %v1265_v0 = vadd.f32 %v1264_v8, %v1235_v16 }
 0x24c   : > { %v1272_v35 = vadd.f32 %v1265_v0, %v1064_v24 }
 0x24e   : > { %2057 = vmatmul.f32.gmra.mxu2 %v3706_v57  ;;  %2086 = vmatmul.f32.gmra.mxu3 %v3709_v51 }
 0x251   : > { %v1238_v37 = vpop.f32.mrf.mxu2  ;;  %v1267_v42 = vpop.f32.mrf.mxu3 }
 0x252   : > { %v1268_v34 = vadd.f32 %v1267_v42, %v1238_v37  ;;  %v2584_v42 = vld [vmem:[%s3895_s4] ss:$0 sm:$0xff] }
 0x254   : > { %v1273_v25 = vadd.f32 %v1268_v34, %v1067_v10 }
 0x256   : > { %2253 = vmatmul.f32.vlgmr.msrb.gmra.mxu2 %v3949_v55  ;;  %2282 = vmatmul.f32.vlgmr.msrb.gmra.mxu3 %v3950_v27 }
 0x259   : > { %v1434_v46 = vpop.f32.mrf.mxu2  ;;  %v1463_v61 = vpop.f32.mrf.mxu3 }
 0x25a   : > { %v1464_v4 = vadd.f32 %v1463_v61, %v1434_v46 }
 0x25c   : > { %v1475_v29 = vadd.f32 %v1464_v4, %v1270_v45 }
 0x25e   : > { %2256 = vmatmul.f32.gmra.mxu2 %v3951_v21  ;;  %2285 = vmatmul.f32.gmra.mxu3 %v3952_v36 }
 0x261   : > { %v1437_v1 = vpop.f32.mrf.mxu2  ;;  %v1466_v57 = vpop.f32.mrf.mxu3 }
 0x262   : > { %v1467_v60 = vadd.f32 %v1466_v57, %v1437_v1 }
 0x264   : > { %v1476_v51 = vadd.f32 %v1467_v60, %v1271_v20 }
 0x266   : > { %2259 = vmatmul.f32.gmra.mxu2 %v3953_v31  ;;  %2288 = vmatmul.f32.gmra.mxu3 %v3954_v3 }
 0x269   : > { %v1440_v18 = vpop.f32.mrf.mxu2  ;;  %v1469_v22 = vpop.f32.mrf.mxu3 }
 0x26a   : > { %v1470_v62 = vadd.f32 %v1469_v22, %v1440_v18 }
 0x26c   : > { %v1477_v6 = vadd.f32 %v1470_v62, %v1272_v35 }
 0x26e   : > { %2262 = vmatmul.f32.gmra.mxu2 %v3693_v59  ;;  %2291 = vmatmul.f32.gmra.mxu3 %v3714_v50 }
 0x271   : > { %v1443_v54 = vpop.f32.mrf.mxu2  ;;  %v1472_v52 = vpop.f32.mrf.mxu3 }
 0x272   : > { %v1473_v41 = vadd.f32 %v1472_v52, %v1443_v54 }
 0x274   : > { %v1478_v12 = vadd.f32 %v1473_v41, %v1273_v25 }
 0x279   : > { %v1639_v58 = vpop.f32.mrf.mxu2  ;;  %v1668_v33 = vpop.f32.mrf.mxu3 }
 0x27a   : > { %v1669_v56 = vadd.f32 %v1668_v33, %v1639_v58 }
 0x27c   : > { %v1680_v11 = vadd.f32 %v1669_v56, %v1475_v29 }
 0x281   : > { %v1642_v13 = vpop.f32.mrf.mxu2  ;;  %v1671_v9 = vpop.f32.mrf.mxu3 }
 0x282   : > { %v1672_v28 = vadd.f32 %v1671_v9, %v1642_v13 }
 0x284   : > { %v1681_v53 = vadd.f32 %v1672_v28, %v1476_v51 }
 0x289   : > { %v1645_v32 = vpop.f32.mrf.mxu2  ;;  %v1674_v7 = vpop.f32.mrf.mxu3 }
 0x28a   : > { %v1675_v40 = vadd.f32 %v1674_v7, %v1645_v32 }
 0x28c   : > { %v1682_v38 = vadd.f32 %v1675_v40, %v1477_v6 }
 0x291   : > { %v1648_v39 = vpop.f32.mrf.mxu2  ;;  %v1677_v59 = vpop.f32.mrf.mxu3 }
 0x292   : > { %v1678_v24 = vadd.f32 %v1677_v59, %v1648_v39 }
 0x294   : > { %v1683_v50 = vadd.f32 %v1678_v24, %v1478_v12 }
 0x299   : > { %v1844_v63 = vpop.f32.mrf.mxu2  ;;  %v1873_v5 = vpop.f32.mrf.mxu3 }
 0x29a   : > { %v1874_v30 = vadd.f32 %v1873_v5, %v1844_v63 }
 0x29c   : > { %v1885_v16 = vadd.f32 %v1874_v30, %v1680_v11 }
 0x2a1   : > { %v1847_v26 = vpop.f32.mrf.mxu2  ;;  %v1876_v10 = vpop.f32.mrf.mxu3 }
 0x2a2   : > { %v1877_v34 = vadd.f32 %v1876_v10, %v1847_v26 }
 0x2a4   : > { %v1886_v46 = vadd.f32 %v1877_v34, %v1681_v53 }
 0x2a9   : > { %v1850_v19 = vpop.f32.mrf.mxu2  ;;  %v1879_v47 = vpop.f32.mrf.mxu3 }
 0x2aa   : > { %v1880_v1 = vadd.f32 %v1879_v47, %v1850_v19 }
 0x2ac   : > { %v1887_v3 = vadd.f32 %v1880_v1, %v1682_v38 }
 0x2b1   : > { %v1853_v49 = vpop.f32.mrf.mxu2  ;;  %v1882_v23 = vpop.f32.mrf.mxu3 }
 0x2b2   : > { %v1883_v41 = vadd.f32 %v1882_v23, %v1853_v49 }
 0x2b4   : > { %v1888_v11 = vadd.f32 %v1883_v41, %v1683_v50 }
 0x2b9   : > { %v2049_v44 = vpop.f32.mrf.mxu2  ;;  %v2078_v45 = vpop.f32.mrf.mxu3 }
 0x2ba   : > { %v2079_v48 = vadd.f32 %v2078_v45, %v2049_v44 }
 0x2bc   : > { %v2090_v35 = vadd.f32 %v2079_v48, %v1885_v16 }
 0x2c1   : > { %v2052_v43 = vpop.f32.mrf.mxu2  ;;  %v2081_v15 = vpop.f32.mrf.mxu3 }
 0x2c2   : > { %v2082_v55 = vadd.f32 %v2081_v15, %v2052_v43 }
 0x2c4   : > { %v2091_v21 = vadd.f32 %v2082_v55, %v1886_v46 }
 0x2c9   : > { %v2055_v2 = vpop.f32.mrf.mxu2  ;;  %v2084_v17 = vpop.f32.mrf.mxu3 }
 0x2ca   : > { %v2085_v60 = vadd.f32 %v2084_v17, %v2055_v2 }
 0x2cc   : > { %v2092_v54 = vadd.f32 %v2085_v60, %v1887_v3 }
 0x2d1   : > { %v2058_v14 = vpop.f32.mrf.mxu2  ;;  %v2087_v20 = vpop.f32.mrf.mxu3 }
 0x2d2   : > { %v2088_v58 = vadd.f32 %v2087_v20, %v2058_v14 }
 0x2d4   : > { %v2093_v7 = vadd.f32 %v2088_v58, %v1888_v11 }
 0x2d9   : > { %v2254_v8 = vpop.f32.mrf.mxu2  ;;  %v2283_v0 = vpop.f32.mrf.mxu3 }
 0x2da   : > { %v2284_v37 = vadd.f32 %v2283_v0, %v2254_v8 }
 0x2dc   : > { %v2295_v25 = vadd.f32 %v2284_v37, %v2090_v35 }
 0x2de   : > { %v3863_v27 = vadd.f32 %v2584_v42, %v2295_v25 }
 0x2e0   : > { %v2569_v61 = vmul.f32 -1.442695, %v3863_v27 }
 0x2e1   : > { %v2257_v4 = vpop.f32.mrf.mxu2  ;;  %v2286_v29 = vpop.f32.mrf.mxu3 }
 0x2e2   : > { %2585 = vpow2.f32 %v2569_v61  ;;  %v2287_v36 = vadd.f32 %v2286_v29, %v2257_v4 }
 0x2e4   : > { %v2296_v57 = vadd.f32 %v2287_v36, %v2091_v21 }
 0x2e6   : > { %v3866_v51 = vadd.f32 %v2584_v42, %v2296_v57 }
 0x2e8   : > { %v2586_v31 = vpop.eup %2585  ;;  %v2570_v18 = vmul.f32 -1.442695, %v3866_v51 }
 0x2e9   : > { %v2319_v22 = vadd.f32 1.0, %v2586_v31  ;;  %v2260_v62 = vpop.f32.mrf.mxu2  ;;  %v2289_v6 = vpop.f32.mrf.mxu3 }
 0x2ea   : > { %2587 = vpow2.f32 %v2570_v18  ;;  %v2290_v52 = vadd.f32 %v2289_v6, %v2260_v62 }
 0x2eb   : > { %2589 = vrcp.f32 %v2319_v22  ;;  %v2334_v24 = vand.u32 2147483648, %v2319_v22  ;;  %v2332_v26 = vand.u32 2147483647, %v2319_v22  ;;  %vm2328_vm9 = vweird.f32 %v2319_v22 }
 0x2ec   : > { %v2297_v12 = vadd.f32 %v2290_v52, %v2092_v54 }
 0x2ed   : > { %v2335_v23 = vor.u32 1.1754944e-38, %v2334_v24  ;;  %vm2333_vm11 = vcmp.eq.f32.partialorder %v2332_v26, 8.507059e+37 }
 0x2ee   : > { %v3869_v33 = vadd.f32 %v2584_v42, %v2297_v12 }
 0x2f0   : > { %v2588_v56 = vpop.eup %2587  ;;  %v2571_v13 = vmul.f32 -1.442695, %v3869_v33 }
 0x2f1   : > { %v2590_v9 = vpop.eup %2589  ;;  %v2320_v28 = vadd.f32 1.0, %v2588_v56  ;;  %v2263_v53 = vpop.f32.mrf.mxu2 }
 0x2f2   : > { %v2292_v32 = vpop.f32.mrf.mxu3  ;;  %2591 = vpow2.f32 %v2571_v13  ;;  %v2324_v38 = vmul.f32 %v2590_v9, %v2319_v22  ;;  %vm2329_vm8 = vweird.f32 %v2590_v9 }
 0x2f3   : > { %v2293_v40 = vadd.f32 %v2292_v32, %v2263_v53  ;;  %2593 = vrcp.f32 %v2320_v28  ;;  %vm2330_vm10 = vmor %vm2328_vm9, %vm2329_vm8  ;;  %v2349_v2 = vand.u32 2147483648, %v2320_v28  ;;  %v2347_v14 = vand.u32 2147483647, %v2320_v28 }
 0x2f4   : > { %v2325_v59 = vsub.f32 1.0, %v2324_v38  ;;  %vm2343_vm13 = vweird.f32 %v2320_v28  ;;  %vm2399_vm8 = vcmask 31744   ;;  %vm2404_vm9 = vcmask 64512  }
 0x2f5   : > { %v2298_v39 = vadd.f32 %v2293_v40, %v2093_v7  ;;  %v2350_v8 = vor.u32 1.1754944e-38, %v2349_v2  ;;  %vm2348_vm15 = vcmp.eq.f32.partialorder %v2347_v14, 8.507059e+37 }
 0x2f6   : > { %v2326_v5 = vmul.f32 %v2590_v9, %v2325_v59 }
 0x2f7   : > { %v3872_v63 = vadd.f32 %v2584_v42, %v2298_v39 }
 0x2f8   : > { %v2592_v50 = vpop.eup %2591  ;;  %v2327_v19 = vadd.f32 %v2590_v9, %v2326_v5 }
 0x2f9   : > { %v2572_v10 = vmul.f32 -1.442695, %v3872_v63  ;;  %v2594_v47 = vpop.eup %2593  ;;  %v2321_v49 = vadd.f32 1.0, %v2592_v50 }
 0x2fa   : > { %v2331_v44 = vsel %vm2330_vm10, %v2590_v9, %v2327_v19  ;;  %v2339_v45 = vmul.f32 %v2594_v47, %v2320_v28  ;;  %vm2344_vm12 = vweird.f32 %v2594_v47 }
 0x2fb   : > { %2595 = vpow2.f32 %v2572_v10  ;;  %v2336_v43 = vsel %vm2333_vm11, %v2335_v23, %v2331_v44  ;;  %vm2345_vm14 = vmor %vm2343_vm13, %vm2344_vm12  ;;  %v2364_v34 = vand.u32 2147483648, %v2321_v49  ;;  %v2362_v55 = vand.u32 2147483647, %v2321_v49 }
 0x2fc   : > { %2597 = vrcp.f32 %v2321_v49  ;;  %2387 = vrot.lane.b32.xlu0 %v2336_v43, %s2609_s15  ;;  %v2340_v15 = vsub.f32 1.0, %v2339_v45  ;;  %vm2358_vm1 = vweird.f32 %v2321_v49 }
 0x2fd   : > { %v2365_v4 = vor.u32 1.1754944e-38, %v2364_v34  ;;  %vm2363_vm3 = vcmp.eq.f32.partialorder %v2362_v55, 8.507059e+37 }
 0x2fe   : > { %v2341_v17 = vmul.f32 %v2594_v47, %v2340_v15 }
 0x300   : > { %v2342_v30 = vadd.f32 %v2594_v47, %v2341_v17 }
 0x301   : > { %v2596_v20 = vpop.eup %2595 }
 0x302   : > { %v2598_v48 = vpop.eup %2597  ;;  %v2322_v16 = vadd.f32 1.0, %v2596_v20  ;;  %v2346_v0 = vsel %vm2345_vm14, %v2594_v47, %v2342_v30 }
 0x303   : > { %v2354_v35 = vmul.f32 %v2598_v48, %v2321_v49  ;;  %v2351_v37 = vsel %vm2348_vm15, %v2350_v8, %v2346_v0  ;;  %vm2359_vm0 = vweird.f32 %v2598_v48 }
 0x304   : > { %2599 = vrcp.f32 %v2322_v16  ;;  %2389 = vrot.lane.b32.xlu0 %v2351_v37, %s2609_s15  ;;  %vm2360_vm2 = vmor %vm2358_vm1, %vm2359_vm0  ;;  %v2379_v57 = vand.u32 2147483648, %v2322_v16  ;;  %v2377_v31 = vand.u32 2147483647, %v2322_v16  ;;  %vm2373_vm5 = vweird.f32 %v2322_v16 }
 0x305   : > { %v2355_v42 = vsub.f32 1.0, %v2354_v35 }
 0x306   : > { %v2380_v18 = vor.u32 1.1754944e-38, %v2379_v57  ;;  %vm2378_vm7 = vcmp.eq.f32.partialorder %v2377_v31, 8.507059e+37 }
 0x307   : > { %v2356_v25 = vmul.f32 %v2598_v48, %v2355_v42 }
 0x309   : > { %v2357_v46 = vadd.f32 %v2598_v48, %v2356_v25 }
 0x30a   : > { %v2600_v61 = vpop.eup %2599 }
 0x30b   : > { %v2361_v29 = vsel %vm2360_vm2, %v2598_v48, %v2357_v46  ;;  %v2369_v21 = vmul.f32 %v2600_v61, %v2322_v16  ;;  %vm2374_vm4 = vweird.f32 %v2600_v61 }
 0x30c   : > { %v2366_v36 = vsel %vm2363_vm3, %v2365_v4, %v2361_v29  ;;  %vm2375_vm6 = vmor %vm2373_vm5, %vm2374_vm4 }
 0x30d   : > { %2391 = vrot.lane.b32.xlu1 %v2366_v36, %s2609_s15  ;;  %v2370_v1 = vsub.f32 1.0, %v2369_v21 }
 0x30f   : > { %v2371_v60 = vmul.f32 %v2600_v61, %v2370_v1 }
 0x311   : > { %v2372_v3 = vadd.f32 %v2600_v61, %v2371_v60 }
 0x313   : > { %v2376_v22 = vsel %vm2375_vm6, %v2600_v61, %v2372_v3 }
 0x314   : > { %v2381_v62 = vsel %vm2378_vm7, %v2380_v18, %v2376_v22 }
 0x315   : > { %2393 = vrot.lane.b32.xlu1 %v2381_v62, %s2609_s15 }
 0x36e   : > { %v2388_v6 = vpop.permute.xlu0 %2387 }
 0x36f   : > { %v2400_v54 = vsel %vm2399_vm8, %v3863_v27, %v2388_v6 }
 0x370   : > { %2405 = vst.msk [vmem:[%s226_s22] sm:$0xff] %vm2404_vm9, %v2400_v54 }
 0x376   : > { %v2390_v52 = vpop.permute.xlu0 %2389 }
 0x377   : > { %v2401_v41 = vsel %vm2399_vm8, %v3866_v51, %v2390_v52 }
 0x378   : > { %2406 = vst.msk [vmem:[%s226_s22 + $0x8] sm:$0xff] %vm2404_vm9, %v2401_v41 }
 0x37f   : > { %v2392_v12 = vpop.permute.xlu1 %2391 }
 0x380   : > { %v2402_v58 = vsel %vm2399_vm8, %v3869_v33, %v2392_v12 }
 0x381   : > { %2407 = vst.msk [vmem:[%s226_s22 + $0x10] sm:$0xff] %vm2404_vm9, %v2402_v58 }
 0x387   : > { %v2394_v56 = vpop.permute.xlu1 %2393 }
 0x388   : > { %v2403_v11 = vsel %vm2399_vm8, %v3872_v63, %v2394_v56 }
 0x389   : > { %2408 = vst.msk [vmem:[%s226_s22 + $0x18] sm:$0xff] %vm2404_vm9, %v2403_v11 }
 0x38a PF: > { %s15_s18 = sadd.s32 1, %s2607_s18  }
 0x38b   : > { %p12_p5 = scmp.ge.s32.totalorder %s15_s18, 4  }
 0x38d   :  { %14 = sbr.rel (!%p12_p5) target bundleno = 1 (0x1), region = 125 }

</bundles_post_ra>
